<compile_context>
chip_gen: v7x
topology: tpu7x:2x2x1
jax: 0.10.0
libtpu: 0.0.40
codegen_flags: <defaults>
</compile_context>

<pallas_src>
import functools

import jax
import jax.numpy as jnp
from jax.experimental import pallas as pl
from jax.experimental.pallas import tpu as pltpu


def _decoder_step_kernel(vcnt_ref,
                         enc_ref, att1_ref, embp_ref, h0_ref, c0_ref,
                         w_hfused_ref, b_fb_ref, w_fa_ref, w_ih_enc_ref,
                         h_out_ref, alpha_out_ref,
                         h_sc, c_sc,
                         *, num_pixels, a_pad, e_pad, att_dtype):
    c_idx = pl.program_id(0)          # batch-chunk axis ("parallel")
    t = pl.program_id(1)              # time axis ("arbitrary" / recurrent)

    # Seed the recurrent state from the precomputed h0 / c0 at the first step of a chunk.
    @pl.when(t == 0)
    def _init():
        h_sc[...] = h0_ref[...]
        c_sc[...] = c0_ref[...]

    h = h_sc[...]                     # (BC, D) f32
    c = c_sc[...]                     # (BC, D) f32
    BC, D = h.shape
    A = att1_ref.shape[2]
    E = enc_ref.shape[2]

    # ---- single fused MXU launch for every h-driven projection ----
    # fused columns: [decoder_att (A) | pad | f_beta (E) | pad | lstm w_hh (4D)]
    h_b = h.astype(jnp.bfloat16)
    hproj = jnp.dot(h_b, w_hfused_ref[...], preferred_element_type=jnp.float32)
    att2 = hproj[:, :A]                                      # (BC, A)  (b_da folded into att1)
    gate_pre = hproj[:, a_pad:a_pad + E] + b_fb_ref[...]     # (BC, E)
    gates_h = hproj[:, a_pad + e_pad:]                       # (BC, 4D)

    # ---- attention scores over pixels ----
    # elementwise chain in att_dtype (bf16 on v6e/v7x, f32 on v5e), f32 accumulation.
    att = jnp.maximum(att1_ref[...].astype(att_dtype)
                      + att2[:, None, :].astype(att_dtype), 0)          # (BC, Pp, A)
    wf = w_fa_ref[...][None, :, :].astype(att_dtype)                    # (1, 1, A)
    scores = jnp.sum(att * wf, axis=-1, dtype=jnp.float32)              # (BC, Pp)
    # full_att bias omitted: softmax over pixels is invariant to a constant shift.

    # masked softmax over the real pixels (exact reciprocal: alphas may feed a regularizer)
    pix = jax.lax.broadcasted_iota(jnp.int32, scores.shape, 1)
    scores = jnp.where(pix < num_pixels, scores, jnp.float32(-1e30))
    m = jnp.max(scores, axis=1, keepdims=True)
    e = jnp.exp(scores - m)
    alpha = e * pl.reciprocal(jnp.sum(e, axis=1, keepdims=True))        # (BC, Pp)

    # ---- attention-weighted encoding on the MXU (no (BC, Pp, E) temporary) ----
    awe = jnp.einsum("bqp,bpe->bqe",
                     alpha[:, None, :].astype(jnp.bfloat16), enc_ref[...],
                     preferred_element_type=jnp.float32)[:, 0, :]       # (BC, E)
    awe = jax.nn.sigmoid(gate_pre) * awe                                # f_beta gate

    # ---- LSTMCell on [embedding_t, gated context]; gate order i, f, g, o ----
    gates = (embp_ref[0] + gates_h
             + jnp.dot(awe.astype(jnp.bfloat16), w_ih_enc_ref[...],
                       preferred_element_type=jnp.float32))             # (BC, 4D)
    i_g = jax.nn.sigmoid(gates[:, 0 * D:1 * D])
    f_g = jax.nn.sigmoid(gates[:, 1 * D:2 * D])
    g_g = jnp.tanh(gates[:, 2 * D:3 * D])
    o_g = jax.nn.sigmoid(gates[:, 3 * D:4 * D])
    c_new = f_g * c + i_g * g_g
    h_new = o_g * jnp.tanh(c_new)

    # Freeze rows past their decode length (batch is length-sorted -> valid rows are a prefix;
    # vcnt_ref[t] == batch_size_t in the PyTorch loop).
    row = jax.lax.broadcasted_iota(jnp.int32, (BC, 1), 0) + c_idx * BC
    valid = row < vcnt_ref[t]
    h_sc[...] = jnp.where(valid, h_new, h)
    c_sc[...] = jnp.where(valid, c_new, c)

    # Per-step outputs; invalid (row, t) positions are zeroed outside the kernel.
    h_out_ref[0] = h_new.astype(h_out_ref.dtype)
    alpha_out_ref[0] = alpha.astype(alpha_out_ref.dtype)


def decoder_with_attention_forward(params, encoder_out, encoded_captions,
                                   caption_lengths, *, num_batch_chunks=1):
    """Mirrors DecoderWithAttention.forward.

    Returns (predictions, encoded_captions_sorted, decode_lengths, alphas, sort_ind).
    """
    B = encoder_out.shape[0]
    E = encoder_out.shape[-1]
    enc = encoder_out.reshape(B, -1, E).astype(jnp.float32)              # (B, P, E)
    P = enc.shape[1]
    D = params["w_hh"].shape[0]
    A = params["w_da"].shape[1]

    assert B % num_batch_chunks == 0
    BC = B // num_batch_chunks
    if num_batch_chunks > 1:
        assert BC % 8 == 0, "batch chunks must be sublane-aligned (multiple of 8 rows)"

    # sort by caption length, descending (stable argsort; torch.sort ties may permute differently)
    cap_len = caption_lengths.reshape(-1)
    sort_ind = jnp.argsort(-cap_len)
    cap_len = cap_len[sort_ind]
    enc = enc[sort_ind]
    caps_sorted = encoded_captions[sort_ind]

    decode_lengths = cap_len - 1
    T = int(jnp.max(decode_lengths))        # host sync; same as max(decode_lengths) in PyTorch

    # ---- hoisted, time-invariant work (done once as large XLA matmuls) ----
    mean_enc = jnp.mean(enc, axis=1)                                     # (B, E)
    h0 = (mean_enc @ params["w_h0"] + params["b_h0"]).astype(jnp.float32)
    c0 = (mean_enc @ params["w_c0"] + params["b_c0"]).astype(jnp.float32)

    # encoder attention projection, with both attention biases folded in
    att1 = (jnp.einsum("bpe,ea->bpa", enc, params["w_ea"])
            + params["b_ea"] + params["b_da"])                           # (B, P, A)

    # hoisted embedding input projection of the LSTM (b_lstm folded in), time-major
    emb = params["embedding"][caps_sorted]                               # (B, Tcap, EMB)
    emb_t = jnp.transpose(emb[:, :T, :], (1, 0, 2))                      # (T, B, EMB)
    emb_proj = (jnp.einsum("tbe,eg->tbg", emb_t.astype(jnp.bfloat16),
                           params["w_ih_emb"].astype(jnp.bfloat16),
                           preferred_element_type=jnp.float32)
                + params["b_lstm"]).astype(jnp.float32)                  # (T, B, 4D)

    # pad pixel axis to a lane-dense multiple of 128
    P_pad = ((P + 127) // 128) * 128
    pad = P_pad - P
    enc_b = jnp.pad(enc, ((0, 0), (0, pad), (0, 0))).astype(jnp.bfloat16)
    att1_b = jnp.pad(att1, ((0, 0), (0, pad), (0, 0))).astype(jnp.bfloat16)

    # fuse the three h-driven weights; each section starts on a 128-lane boundary
    A_pad = ((A + 127) // 128) * 128
    E_pad = ((E + 127) // 128) * 128
    w_hfused = jnp.zeros((D, A_pad + E_pad + 4 * D), jnp.float32)
    w_hfused = w_hfused.at[:, :A].set(params["w_da"])
    w_hfused = w_hfused.at[:, A_pad:A_pad + E].set(params["w_fb"])
    w_hfused = w_hfused.at[:, A_pad + E_pad:].set(params["w_hh"])
    w_hfused = w_hfused.astype(jnp.bfloat16)

    w_fa = params["w_fa"].astype(jnp.float32)                            # (1, A)
    b_fb = params["b_fb"].astype(jnp.float32)                            # (1, E)
    w_ih_enc = params["w_ih_enc"].astype(jnp.bfloat16)                   # (E, 4D)
    weights = [w_hfused, b_fb, w_fa, w_ih_enc]

    # per-step valid-row count (batch_size_t in the PyTorch loop) -> SMEM scalar prefetch
    vcnt = jnp.sum(decode_lengths[None, :] > jnp.arange(T)[:, None],
                   axis=1).astype(jnp.int32)                             # (T,)

    # bf16 elementwise attention chain only on bf16-native VPUs (v6e / v7x); f32 otherwise
    kind = jax.devices()[0].device_kind.lower()
    att_dtype = jnp.bfloat16 if ("v6" in kind or "v7" in kind or "7x" in kind) else jnp.float32

    def chunk3(c, t, vc):
        return (c, 0, 0)

    def chunk2(c, t, vc):
        return (c, 0)

    def step3(c, t, vc):
        return (t, c, 0)

    in_specs = [
        pl.BlockSpec((BC, P_pad, E), chunk3),    # encoder block (resident per chunk)
        pl.BlockSpec((BC, P_pad, A), chunk3),    # precomputed encoder_att projection
        pl.BlockSpec((1, BC, 4 * D), step3),     # hoisted embedding projection at step t
        pl.BlockSpec((BC, D), chunk2),           # h0
        pl.BlockSpec((BC, D), chunk2),           # c0
    ] + [pl.BlockSpec(w.shape, lambda c, t, vc, nd=w.ndim: (0,) * nd) for w in weights]

    out_specs = [
        pl.BlockSpec((1, BC, D), step3),         # h_t   (fc head applied outside)
        pl.BlockSpec((1, BC, P_pad), step3),     # alpha_t (bf16; cropped / upcast outside)
    ]

    # explicit scoped-VMEM budget: resident tiles x double-buffering + headroom.
    # (At production sizes re-derive BC / num_batch_chunks so this stays under ~48 MiB,
    #  especially on v7x's 64 MiB VMEM.)
    resident = 2 * (BC * P_pad * E * 2 + BC * P_pad * A * 2 + BC * 4 * D * 4
                    + 2 * BC * D * 4
                    + sum(int(w.size) * w.dtype.itemsize for w in weights)
                    + BC * D * 2 + BC * P_pad * 2) + 2 * BC * D * 4
    vmem_limit = int(min(max(resident * 1.25 + (2 << 20), 16 << 20), 48 << 20))

    h_tbd, alpha_tbp = pl.pallas_call(
        functools.partial(_decoder_step_kernel, num_pixels=P,
                          a_pad=A_pad, e_pad=E_pad, att_dtype=att_dtype),
        out_shape=(jax.ShapeDtypeStruct((T, B, D), jnp.bfloat16),
                   jax.ShapeDtypeStruct((T, B, P_pad), jnp.bfloat16)),
        grid_spec=pltpu.PrefetchScalarGridSpec(
            num_scalar_prefetch=1,
            grid=(num_batch_chunks, T),
            in_specs=in_specs,
            out_specs=out_specs,
            scratch_shapes=[pltpu.VMEM((BC, D), jnp.float32),   # h state
                            pltpu.VMEM((BC, D), jnp.float32)],  # c state
        ),
        compiler_params=pltpu.CompilerParams(
            dimension_semantics=("parallel", "arbitrary"),      # batch-chunks ||, time sequential
            vmem_limit_bytes=vmem_limit),
    )(vcnt, enc_b, att1_b, emb_proj, h0, c0, *weights)

    # ---- vocab head: one big, MXU-friendly batched matmul over all (b, t) rows ----
    # TODO(synk): nn.Dropout before the fc head is treated as identity (inference mode).
    h_btd = jnp.transpose(h_tbd, (1, 0, 2))                              # (B, T, D)
    logits = jnp.einsum("btd,dv->btv", h_btd,
                        params["w_fc"].astype(jnp.bfloat16),
                        preferred_element_type=jnp.float32) + params["b_fc"]

    # zero positions past each row's decode length (matches PyTorch's zero-init buffers)
    valid_bt = jnp.arange(T)[None, :] < decode_lengths[:, None]          # (B, T)
    predictions = jnp.where(valid_bt[:, :, None], logits, 0.0)
    alphas = jnp.transpose(alpha_tbp.astype(jnp.float32), (1, 0, 2))[:, :, :P]
    alphas = jnp.where(valid_bt[:, :, None], alphas, 0.0)

    return predictions, caps_sorted, decode_lengths, alphas, sort_ind


def init_params(key, attention_dim, embed_dim, decoder_dim, vocab_size, encoder_dim):
    """Deterministic synthetic parameters. Linear weights are stored pre-transposed
    as (in_dim, out_dim) so matmuls are plain row-major."""
    A, EMB, D, V, E = attention_dim, embed_dim, decoder_dim, vocab_size, encoder_dim
    keys = jax.random.split(key, 20)

    def u(k, shape, scale=0.1):
        return jax.random.uniform(k, shape, jnp.float32, -scale, scale)

    return {
        "embedding": u(keys[0], (V, EMB)),
        # Attention
        "w_ea": u(keys[1], (E, A)), "b_ea": u(keys[2], (1, A)),
        "w_da": u(keys[3], (D, A)), "b_da": u(keys[4], (1, A)),
        "w_fa": u(keys[5], (1, A)), "b_fa": u(keys[6], (1, 1)),
        # f_beta gate
        "w_fb": u(keys[7], (D, E)), "b_fb": u(keys[8], (1, E)),
        # LSTMCell: input weight split by [embedding | attention context] rows
        "w_ih_emb": u(keys[9], (EMB, 4 * D)),
        "w_ih_enc": u(keys[10], (E, 4 * D)),
        "w_hh": u(keys[11], (D, 4 * D)),
        "b_lstm": u(keys[12], (1, 4 * D)),     # b_ih + b_hh folded together
        # init_h / init_c
        "w_h0": u(keys[13], (E, D)), "b_h0": u(keys[14], (1, D)),
        "w_c0": u(keys[15], (E, D)), "b_c0": u(keys[16], (1, D)),
        # fc head (bias filled with 0 as in init_weights)
        "w_fc": u(keys[17], (D, V)), "b_fc": jnp.zeros((1, V), jnp.float32),
    }


if __name__ == "__main__":
    key = jax.random.PRNGKey(0)
    attention_dim, embed_dim, decoder_dim, vocab_size, encoder_dim = 32, 16, 32, 40, 32
    B, HW, max_cap_len = 4, 4, 8

    kp, ke, kc = jax.random.split(key, 3)
    params = init_params(kp, attention_dim, embed_dim, decoder_dim, vocab_size, encoder_dim)

    encoder_out = jax.random.normal(ke, (B, HW, HW, encoder_dim), jnp.float32)
    encoded_captions = jax.random.randint(kc, (B, max_cap_len), 0, vocab_size)
    caption_lengths = jnp.array([[6], [8], [3], [5]], dtype=jnp.int32)

    preds, caps_sorted, dec_lens, alphas, sort_ind = decoder_with_attention_forward(
        params, encoder_out, encoded_captions, caption_lengths)

    jax.block_until_ready((preds, alphas, caps_sorted, dec_lens, sort_ind))
    T = int(jnp.max(caption_lengths)) - 1
    assert preds.shape == (B, T, vocab_size)
    assert alphas.shape == (B, T, HW * HW)
    print("KERNEL_OK")
</pallas_src>

<mosaic_0001>
module attributes {stable_mosaic.version = 11 : i64} {
  func.func @_decoder_step_kernel(%arg0: i32, %arg1: i32, %arg2: memref<7xi32, #tpu.memory_space<smem>>, %arg3: memref<4x128x32xbf16, #tpu.memory_space<vmem>>, %arg4: memref<4x128x32xbf16, #tpu.memory_space<vmem>>, %arg5: memref<1x4x128xf32, #tpu.memory_space<vmem>>, %arg6: memref<4x32xf32, #tpu.memory_space<vmem>>, %arg7: memref<4x32xf32, #tpu.memory_space<vmem>>, %arg8: memref<32x384xbf16, #tpu.memory_space<vmem>>, %arg9: memref<1x32xf32, #tpu.memory_space<vmem>>, %arg10: memref<1x32xf32, #tpu.memory_space<vmem>>, %arg11: memref<32x128xbf16, #tpu.memory_space<vmem>>, %arg12: memref<1x4x32xbf16, #tpu.memory_space<vmem>>, %arg13: memref<1x4x128xbf16, #tpu.memory_space<vmem>>, %arg14: memref<4x32xf32, #tpu.memory_space<vmem>>, %arg15: memref<4x32xf32, #tpu.memory_space<vmem>>) attributes {dimension_semantics = [#tpu.dimension_semantics<parallel>, #tpu.dimension_semantics<arbitrary>], iteration_bounds = array<i64: 1, 7>, scalar_prefetch = 1 : i64, scratch_operands = 2 : i64, tpu.core_type = #tpu.core_type<tc>, window_params = [{transform_indices = @transform_0, window_bounds = array<i64: 4, 128, 32>}, {transform_indices = @transform_1, window_bounds = array<i64: 4, 128, 32>}, {transform_indices = @transform_2, window_bounds = array<i64: 1, 4, 128>}, {transform_indices = @transform_3, window_bounds = array<i64: 4, 32>}, {transform_indices = @transform_4, window_bounds = array<i64: 4, 32>}, {pipeline_mode = #tpu.pipeline_mode<synchronous>, transform_indices = @transform_5, window_bounds = array<i64: 32, 384>}, {pipeline_mode = #tpu.pipeline_mode<synchronous>, transform_indices = @transform_6, window_bounds = array<i64: 1, 32>}, {pipeline_mode = #tpu.pipeline_mode<synchronous>, transform_indices = @transform_7, window_bounds = array<i64: 1, 32>}, {pipeline_mode = #tpu.pipeline_mode<synchronous>, transform_indices = @transform_8, window_bounds = array<i64: 32, 128>}, {transform_indices = @transform_9, window_bounds = array<i64: 1, 4, 32>}, {transform_indices = @transform_10, window_bounds = array<i64: 1, 4, 128>}]} {
    %c0_i32 = arith.constant 0 : i32
    %0 = arith.cmpi eq, %arg1, %c0_i32 : i32
    %1 = arith.extui %0 : i1 to i32
    %c0_i32_0 = arith.constant 0 : i32
    %2 = arith.cmpi ne, %1, %c0_i32_0 : i32
    scf.if %2 {
      %c0_42 = arith.constant 0 : index
      %c0_43 = arith.constant 0 : index
      %108 = vector.load %arg6[%c0_42, %c0_43] : memref<4x32xf32, #tpu.memory_space<vmem>>, vector<4x32xf32>
      %c0_44 = arith.constant 0 : index
      %c0_45 = arith.constant 0 : index
      %109 = vector.load %arg14[%c0_44, %c0_45] : memref<4x32xf32, #tpu.memory_space<vmem>>, vector<4x32xf32>
      tpu.vector_store %arg14[%c0_44, %c0_45], %108 {strides = array<i32>} : memref<4x32xf32, #tpu.memory_space<vmem>>, vector<4x32xf32>,
      %c0_46 = arith.constant 0 : index
      %c0_47 = arith.constant 0 : index
      %110 = vector.load %arg7[%c0_46, %c0_47] : memref<4x32xf32, #tpu.memory_space<vmem>>, vector<4x32xf32>
      %c0_48 = arith.constant 0 : index
      %c0_49 = arith.constant 0 : index
      %111 = vector.load %arg15[%c0_48, %c0_49] : memref<4x32xf32, #tpu.memory_space<vmem>>, vector<4x32xf32>
      tpu.vector_store %arg15[%c0_48, %c0_49], %110 {strides = array<i32>} : memref<4x32xf32, #tpu.memory_space<vmem>>, vector<4x32xf32>,
    } else {
    }
    %c0 = arith.constant 0 : index
    %c0_1 = arith.constant 0 : index
    %3 = vector.load %arg14[%c0, %c0_1] : memref<4x32xf32, #tpu.memory_space<vmem>>, vector<4x32xf32>
    %c0_2 = arith.constant 0 : index
    %c0_3 = arith.constant 0 : index
    %4 = vector.load %arg15[%c0_2, %c0_3] : memref<4x32xf32, #tpu.memory_space<vmem>>, vector<4x32xf32>
    %5 = arith.truncf %3 : vector<4x32xf32> to vector<4x32xbf16>
    %c0_4 = arith.constant 0 : index
    %c0_5 = arith.constant 0 : index
    %6 = vector.load %arg8[%c0_4, %c0_5] : memref<32x384xbf16, #tpu.memory_space<vmem>>, vector<32x384xbf16>
    %cst = arith.constant dense<0.000000e+00> : vector<4x384xf32>
    %7 = tpu.matmul %5, %6, %cst {dimension_numbers = #tpu.dot_dimension_numbers<[1], [0], [0], [1], [0, 0, 1, 1], [], []>} : vector<4x32xbf16>, vector<32x384xbf16>, vector<4x384xf32> -> vector<4x384xf32>
    %8 = vector.extract_strided_slice %7 {offsets = [0, 0], sizes = [4, 32], strides = [1, 1]} : vector<4x384xf32> to vector<4x32xf32>
    %9 = vector.extract_strided_slice %7 {offsets = [0, 128], sizes = [4, 32], strides = [1, 1]} : vector<4x384xf32> to vector<4x32xf32>
    %c0_6 = arith.constant 0 : index
    %c0_7 = arith.constant 0 : index
    %10 = vector.load %arg9[%c0_6, %c0_7] : memref<1x32xf32, #tpu.memory_space<vmem>>, vector<1x32xf32>
    %11 = vector.broadcast %10 : vector<1x32xf32> to vector<4x32xf32>
    %12 = arith.addf %9, %11 : vector<4x32xf32>
    %13 = vector.extract_strided_slice %7 {offsets = [0, 256], sizes = [4, 128], strides = [1, 1]} : vector<4x384xf32> to vector<4x128xf32>
    %c0_8 = arith.constant 0 : index
    %c0_9 = arith.constant 0 : index
    %c0_10 = arith.constant 0 : index
    %14 = vector.load %arg4[%c0_8, %c0_9, %c0_10] : memref<4x128x32xbf16, #tpu.memory_space<vmem>>, vector<4x128x32xbf16>
    %15 = arith.extf %14 : vector<4x128x32xbf16> to vector<4x128x32xf32>
    %16 = vector.shape_cast %8 : vector<4x32xf32> to vector<4x1x32xf32>
    %17 = vector.broadcast %16 : vector<4x1x32xf32> to vector<4x128x32xf32>
    %18 = arith.addf %15, %17 : vector<4x128x32xf32>
    %cst_11 = arith.constant 0.000000e+00 : f32
    %19 = vector.broadcast %cst_11 : f32 to vector<4x128x32xf32>
    %20 = arith.maximumf %18, %19 : vector<4x128x32xf32>
    %c0_12 = arith.constant 0 : index
    %c0_13 = arith.constant 0 : index
    %21 = vector.load %arg10[%c0_12, %c0_13] : memref<1x32xf32, #tpu.memory_space<vmem>>, vector<1x32xf32>
    %22 = vector.shape_cast %21 : vector<1x32xf32> to vector<1x1x32xf32>
    %23 = vector.broadcast %22 : vector<1x1x32xf32> to vector<4x128x32xf32>
    %24 = arith.mulf %20, %23 : vector<4x128x32xf32>
    %cst_14 = arith.constant dense<0.000000e+00> : vector<4x128xf32>
    %25 = vector.multi_reduction <add>, %24, %cst_14 [2] : vector<4x128x32xf32> to vector<4x128xf32>
    %26 = tpu.iota {dimensions = array<i32: 1>} : vector<4x128xi32>
    %c16_i32 = arith.constant 16 : i32
    %27 = vector.broadcast %c16_i32 : i32 to vector<4x128xi32>
    %28 = arith.cmpi slt, %26, %27 : vector<4x128xi32>
    %cst_15 = arith.constant -1.000000e+30 : f32
    %29 = vector.broadcast %cst_15 : f32 to vector<4x128xf32>
    %30 = arith.select %28, %25, %29 : vector<4x128xi1>, vector<4x128xf32>
    %cst_16 = arith.constant dense<0xFF800000> : vector<4xf32>
    %31 = vector.multi_reduction <maximumf>, %30, %cst_16 [1] : vector<4x128xf32> to vector<4xf32>
    %32 = vector.shape_cast %31 : vector<4xf32> to vector<4x1xf32>
    %33 = vector.broadcast %32 : vector<4x1xf32> to vector<4x128xf32>
    %34 = arith.subf %30, %33 : vector<4x128xf32>
    %35 = math.exp %34 : vector<4x128xf32>
    %cst_17 = arith.constant dense<0.000000e+00> : vector<4xf32>
    %36 = vector.multi_reduction <add>, %35, %cst_17 [1] : vector<4x128xf32> to vector<4xf32>
    %37 = vector.shape_cast %36 : vector<4xf32> to vector<4x1xf32>
    %38 = tpu.reciprocal %37 : vector<4x1xf32> -> vector<4x1xf32>
    %39 = vector.broadcast %38 : vector<4x1xf32> to vector<4x128xf32>
    %40 = arith.mulf %35, %39 : vector<4x128xf32>
    %41 = vector.shape_cast %40 : vector<4x128xf32> to vector<4x1x128xf32>
    %42 = arith.truncf %41 : vector<4x1x128xf32> to vector<4x1x128xbf16>
    %c0_18 = arith.constant 0 : index
    %c0_19 = arith.constant 0 : index
    %c0_20 = arith.constant 0 : index
    %43 = vector.load %arg3[%c0_18, %c0_19, %c0_20] : memref<4x128x32xbf16, #tpu.memory_space<vmem>>, vector<4x128x32xbf16>
    "tpu.trace_start"() <{level = 10 : i32, message = "bqp,bpe->bqe"}> : () -> ()
    %cst_21 = arith.constant dense<0.000000e+00> : vector<4x1x32xf32>
    %44 = tpu.matmul %42, %43, %cst_21 {dimension_numbers = #tpu.dot_dimension_numbers<[2], [1], [1], [2], [0, 0, 0, 1, 1, 2], [0], [0]>} : vector<4x1x128xbf16>, vector<4x128x32xbf16>, vector<4x1x32xf32> -> vector<4x1x32xf32>
    "tpu.trace_stop"() : () -> ()
    %45 = vector.shape_cast %44 : vector<4x1x32xf32> to vector<4x32xf32>
    %46 = arith.negf %12 : vector<4x32xf32>
    %47 = math.exp %46 : vector<4x32xf32>
    %cst_22 = arith.constant 1.000000e+00 : f32
    %48 = vector.broadcast %cst_22 : f32 to vector<4x32xf32>
    %49 = arith.addf %48, %47 : vector<4x32xf32>
    %50 = arith.divf %48, %49 : vector<4x32xf32>
    %51 = arith.mulf %50, %45 : vector<4x32xf32>
    %c0_23 = arith.constant 0 : index
    %c0_24 = arith.constant 0 : index
    %c0_25 = arith.constant 0 : index
    %52 = vector.load %arg5[%c0_23, %c0_24, %c0_25] : memref<1x4x128xf32, #tpu.memory_space<vmem>>, vector<1x4x128xf32>
    %53 = vector.shape_cast %52 : vector<1x4x128xf32> to vector<4x128xf32>
    %54 = arith.addf %53, %13 : vector<4x128xf32>
    %55 = arith.truncf %51 : vector<4x32xf32> to vector<4x32xbf16>
    %c0_26 = arith.constant 0 : index
    %c0_27 = arith.constant 0 : index
    %56 = vector.load %arg11[%c0_26, %c0_27] : memref<32x128xbf16, #tpu.memory_space<vmem>>, vector<32x128xbf16>
    %cst_28 = arith.constant dense<0.000000e+00> : vector<4x128xf32>
    %57 = tpu.matmul %55, %56, %cst_28 {dimension_numbers = #tpu.dot_dimension_numbers<[1], [0], [0], [1], [0, 0, 1, 1], [], []>} : vector<4x32xbf16>, vector<32x128xbf16>, vector<4x128xf32> -> vector<4x128xf32>
    %58 = arith.addf %54, %57 : vector<4x128xf32>
    %59 = vector.extract_strided_slice %58 {offsets = [0, 0], sizes = [4, 32], strides = [1, 1]} : vector<4x128xf32> to vector<4x32xf32>
    %60 = arith.negf %59 : vector<4x32xf32>
    %61 = math.exp %60 : vector<4x32xf32>
    %cst_29 = arith.constant 1.000000e+00 : f32
    %62 = vector.broadcast %cst_29 : f32 to vector<4x32xf32>
    %63 = arith.addf %62, %61 : vector<4x32xf32>
    %64 = arith.divf %62, %63 : vector<4x32xf32>
    %65 = vector.extract_strided_slice %58 {offsets = [0, 32], sizes = [4, 32], strides = [1, 1]} : vector<4x128xf32> to vector<4x32xf32>
    %66 = arith.negf %65 : vector<4x32xf32>
    %67 = math.exp %66 : vector<4x32xf32>
    %cst_30 = arith.constant 1.000000e+00 : f32
    %68 = vector.broadcast %cst_30 : f32 to vector<4x32xf32>
    %69 = arith.addf %68, %67 : vector<4x32xf32>
    %70 = arith.divf %68, %69 : vector<4x32xf32>
    %71 = vector.extract_strided_slice %58 {offsets = [0, 64], sizes = [4, 32], strides = [1, 1]} : vector<4x128xf32> to vector<4x32xf32>
    %72 = math.tanh %71 : vector<4x32xf32>
    %73 = vector.extract_strided_slice %58 {offsets = [0, 96], sizes = [4, 32], strides = [1, 1]} : vector<4x128xf32> to vector<4x32xf32>
    %74 = arith.negf %73 : vector<4x32xf32>
    %75 = math.exp %74 : vector<4x32xf32>
    %cst_31 = arith.constant 1.000000e+00 : f32
    %76 = vector.broadcast %cst_31 : f32 to vector<4x32xf32>
    %77 = arith.addf %76, %75 : vector<4x32xf32>
    %78 = arith.divf %76, %77 : vector<4x32xf32>
    %79 = arith.mulf %70, %4 : vector<4x32xf32>
    %80 = arith.mulf %64, %72 : vector<4x32xf32>
    %81 = arith.addf %79, %80 : vector<4x32xf32>
    %82 = math.tanh %81 : vector<4x32xf32>
    %83 = arith.mulf %78, %82 : vector<4x32xf32>
    %84 = tpu.iota {dimensions = array<i32: 0>} : vector<4x1xi32>
    %c4_i32 = arith.constant 4 : i32
    %85 = arith.muli %arg0, %c4_i32 : i32
    %86 = vector.broadcast %85 : i32 to vector<4x1xi32>
    %87 = arith.addi %84, %86 : vector<4x1xi32>
    %88 = arith.index_cast %arg1 : i32 to index
    %89 = memref.load %arg2[%88] : memref<7xi32, #tpu.memory_space<smem>>
    %90 = vector.broadcast %89 : i32 to vector<4x1xi32>
    %91 = arith.cmpi slt, %87, %90 : vector<4x1xi32>
    %92 = vector.shape_cast %91 : vector<4x1xi1> to vector<4x1xi1>
    %93 = vector.broadcast %92 : vector<4x1xi1> to vector<4x32xi1>
    %94 = arith.select %93, %83, %3 : vector<4x32xi1>, vector<4x32xf32>
    %c0_32 = arith.constant 0 : index
    %c0_33 = arith.constant 0 : index
    %95 = vector.load %arg14[%c0_32, %c0_33] : memref<4x32xf32, #tpu.memory_space<vmem>>, vector<4x32xf32>
    tpu.vector_store %arg14[%c0_32, %c0_33], %94 {strides = array<i32>} : memref<4x32xf32, #tpu.memory_space<vmem>>, vector<4x32xf32>,
    %96 = vector.shape_cast %91 : vector<4x1xi1> to vector<4x1xi1>
    %97 = vector.broadcast %96 : vector<4x1xi1> to vector<4x32xi1>
    %98 = arith.select %97, %81, %4 : vector<4x32xi1>, vector<4x32xf32>
    %c0_34 = arith.constant 0 : index
    %c0_35 = arith.constant 0 : index
    %99 = vector.load %arg15[%c0_34, %c0_35] : memref<4x32xf32, #tpu.memory_space<vmem>>, vector<4x32xf32>
    tpu.vector_store %arg15[%c0_34, %c0_35], %98 {strides = array<i32>} : memref<4x32xf32, #tpu.memory_space<vmem>>, vector<4x32xf32>,
    %100 = arith.truncf %83 : vector<4x32xf32> to vector<4x32xbf16>
    %c0_36 = arith.constant 0 : index
    %c0_37 = arith.constant 0 : index
    %c0_38 = arith.constant 0 : index
    %101 = vector.load %arg12[%c0_36, %c0_37, %c0_38] : memref<1x4x32xbf16, #tpu.memory_space<vmem>>, vector<1x4x32xbf16>
    %102 = vector.shape_cast %101 : vector<1x4x32xbf16> to vector<4x32xbf16>
    %103 = vector.shape_cast %100 : vector<4x32xbf16> to vector<1x4x32xbf16>
    tpu.vector_store %arg12[%c0_36, %c0_37, %c0_38], %103 {strides = array<i32>} : memref<1x4x32xbf16, #tpu.memory_space<vmem>>, vector<1x4x32xbf16>,
    %104 = arith.truncf %40 : vector<4x128xf32> to vector<4x128xbf16>
    %c0_39 = arith.constant 0 : index
    %c0_40 = arith.constant 0 : index
    %c0_41 = arith.constant 0 : index
    %105 = vector.load %arg13[%c0_39, %c0_40, %c0_41] : memref<1x4x128xbf16, #tpu.memory_space<vmem>>, vector<1x4x128xbf16>
    %106 = vector.shape_cast %105 : vector<1x4x128xbf16> to vector<4x128xbf16>
    %107 = vector.shape_cast %104 : vector<4x128xbf16> to vector<1x4x128xbf16>
    tpu.vector_store %arg13[%c0_39, %c0_40, %c0_41], %107 {strides = array<i32>} : memref<1x4x128xbf16, #tpu.memory_space<vmem>>, vector<1x4x128xbf16>,
    return
  }
  func.func @transform_0(%arg0: i32, %arg1: i32, %arg2: memref<7xi32, #tpu.memory_space<smem>>) -> (i32, i32, i32) {
    %c0_i32 = arith.constant 0 : i32
    %c0_i32_0 = arith.constant 0 : i32
    %c0_i32_1 = arith.constant 0 : i32
    return %arg0, %c0_i32, %c0_i32_0 : i32, i32, i32
  }
  func.func @transform_1(%arg0: i32, %arg1: i32, %arg2: memref<7xi32, #tpu.memory_space<smem>>) -> (i32, i32, i32) {
    %c0_i32 = arith.constant 0 : i32
    %c0_i32_0 = arith.constant 0 : i32
    %c0_i32_1 = arith.constant 0 : i32
    return %arg0, %c0_i32, %c0_i32_0 : i32, i32, i32
  }
  func.func @transform_2(%arg0: i32, %arg1: i32, %arg2: memref<7xi32, #tpu.memory_space<smem>>) -> (i32, i32, i32) {
    %c0_i32 = arith.constant 0 : i32
    %c0_i32_0 = arith.constant 0 : i32
    return %arg1, %arg0, %c0_i32 : i32, i32, i32
  }
  func.func @transform_3(%arg0: i32, %arg1: i32, %arg2: memref<7xi32, #tpu.memory_space<smem>>) -> (i32, i32) {
    %c0_i32 = arith.constant 0 : i32
    %c0_i32_0 = arith.constant 0 : i32
    return %arg0, %c0_i32 : i32, i32
  }
  func.func @transform_4(%arg0: i32, %arg1: i32, %arg2: memref<7xi32, #tpu.memory_space<smem>>) -> (i32, i32) {
    %c0_i32 = arith.constant 0 : i32
    %c0_i32_0 = arith.constant 0 : i32
    return %arg0, %c0_i32 : i32, i32
  }
  func.func @transform_5(%arg0: i32, %arg1: i32, %arg2: memref<7xi32, #tpu.memory_space<smem>>) -> (i32, i32) {
    %c0_i32 = arith.constant 0 : i32
    %c0_i32_0 = arith.constant 0 : i32
    %c0_i32_1 = arith.constant 0 : i32
    return %c0_i32, %c0_i32_0 : i32, i32
  }
  func.func @transform_6(%arg0: i32, %arg1: i32, %arg2: memref<7xi32, #tpu.memory_space<smem>>) -> (i32, i32) {
    %c0_i32 = arith.constant 0 : i32
    %c0_i32_0 = arith.constant 0 : i32
    %c0_i32_1 = arith.constant 0 : i32
    return %c0_i32, %c0_i32_0 : i32, i32
  }
  func.func @transform_7(%arg0: i32, %arg1: i32, %arg2: memref<7xi32, #tpu.memory_space<smem>>) -> (i32, i32) {
    %c0_i32 = arith.constant 0 : i32
    %c0_i32_0 = arith.constant 0 : i32
    %c0_i32_1 = arith.constant 0 : i32
    return %c0_i32, %c0_i32_0 : i32, i32
  }
  func.func @transform_8(%arg0: i32, %arg1: i32, %arg2: memref<7xi32, #tpu.memory_space<smem>>) -> (i32, i32) {
    %c0_i32 = arith.constant 0 : i32
    %c0_i32_0 = arith.constant 0 : i32
    %c0_i32_1 = arith.constant 0 : i32
    return %c0_i32, %c0_i32_0 : i32, i32
  }
  func.func @transform_9(%arg0: i32, %arg1: i32, %arg2: memref<7xi32, #tpu.memory_space<smem>>) -> (i32, i32, i32) {
    %c0_i32 = arith.constant 0 : i32
    %c0_i32_0 = arith.constant 0 : i32
    return %arg1, %arg0, %c0_i32 : i32, i32, i32
  }
  func.func @transform_10(%arg0: i32, %arg1: i32, %arg2: memref<7xi32, #tpu.memory_space<smem>>) -> (i32, i32, i32) {
    %c0_i32 = arith.constant 0 : i32
    %c0_i32_0 = arith.constant 0 : i32
    return %arg1, %arg0, %c0_i32 : i32, i32, i32
  }
}

</mosaic_0001>

<bundles_post_ra>
// kernel: tpu_custom_call.1
= control target key start
LH: loop header
LB: loop body
LE: loop exit
PB: predicated region body
PF: predicated region fallthrough
CT: control target
= control target key end

     0   :  { %s4406_s0 = inlined_call_operand.vmem [shape: s32[7], index: 0, kind: input, shape index: {}]   ;;  %s4407_s1 = inlined_call_operand.vmem [shape: bf16[4,128,32], index: 1, kind: input, shape index: {}]   ;;  %s4408_s2 = inlined_call_operand.vmem [shape: bf16[4,128,32], index: 2, kind: input, shape index: {}]   ;;  %s4409_s3 = inlined_call_operand.vmem [shape: f32[7,4,128], index: 3, kind: input, shape index: {}]   ;;  %s4410_s4 = inlined_call_operand.vmem [shape: f32[4,32], index: 4, kind: input, shape index: {}]   ;;  %s4411_s5 = inlined_call_operand.vmem [shape: f32[4,32], index: 5, kind: input, shape index: {}]   ;;  %s4412_s6 = inlined_call_operand.vmem [shape: bf16[32,384], index: 6, kind: input, shape index: {}]   ;;  %s4413_s7 = inlined_call_operand.vmem [shape: f32[1,32], index: 7, kind: input, shape index: {}]   ;;  %s4414_s8 = inlined_call_operand.vmem [shape: f32[1,32], index: 8, kind: input, shape index: {}]   ;;  %s4415_s9 = inlined_call_operand.vmem [shape: bf16[32,128], index: 9, kind: input, shape index: {}]   ;;  %s4416_s10 = inlined_call_operand.hbm [shape: bf16[7,4,32], index: 10, kind: output, shape index: {0}]   ;;  %s4417_s11 = inlined_call_operand.hbm [shape: bf16[7,4,128], index: 11, kind: output, shape index: {1}]  }
   0x1   :  { %s17_s19 = sshll.u32 %s4406_s0, 4  ;;  %s18_s19 = int_to_ptr.vmem [resolvable:$true] %s17_s19 }
   0x2   :  { %s2922_s20 = scalar_lea.vmem %s18_s19, 16  ;;  %p2927_p1 = scmp.lt.s32.totalorder %s18_s19, %s18_s19 }
   0x3   :  { %p2923_p0 = scmp.ne.s32.totalorder %s18_s19, %s2922_s20  ;;  %p2928_p2 = scmp.lt.s32.totalorder %s2922_s20, %s2922_s20 }
   0x5   :  { %p2929_p3 = por %p2928_p2, %p2927_p1 }
   0x7   :  { %p2930_p4 = pnand %p2929_p3, %p2923_p0 }
   0x9   :  { %2933 = shalt.err (!%p2930_p4)  }
   0xa   :  { %s3048_s21 = smov [#allocation5]  }
   0xb   :  { %20 = dma.vmem_to_smem %s18_s19, 16, %s3048_s21, [#allocation4] }
   0xc   :  { %3014 = dma.done.wait [#allocation4], 16 }
   0xd   :  { %3015 = vsyncadd [#allocation4], 4294967280 }
   0xe   :  { %22 = sfence }
   0xf   :  { %23 = vsyncpa [#allocation7], 0 }
  0x10   :  { %25 = vsyncpa [#allocation7 + $0x1], 0 }
  0x11   :  { %26 = vsyncpa [#allocation9], 0 }
  0x12   :  { %28 = vsyncpa [#allocation9 + $0x1], 0  ;;  %s3122_s22 = smov 0   ;;  %s3124_s0 = smov 0  }
  0x13   :  { %s3126_s23 = smov 0   ;;  %s3128_s24 = smov 0  }
  0x14   :  { %s3130_s25 = smov 0   ;;  %s3132_s26 = smov 0  }
  0x15 LB: > { %4426 = sst [smem:[#allocation13_spill]] %s3042_s25  ;;  %s2426_s27 = sadd.s32 4294967295, %s3046_s26   ;;  %s3046_s26 = sphi %s3132_s26, %s34_s26   ;;  %s3042_s25 = sphi %s3130_s25, %s4476_s25   ;;  %s3038_s24 = sphi %s3128_s24, %s4475_s24   ;;  %s3034_s23 = sphi %s3126_s23, %s4479_s23   ;;  %s3030_s0 = sphi %s3124_s0, %s4478_s0   ;;  %s3026_s22 = sphi %s3122_s22, %s4477_s22  }
  0x16   : > { %s2427_s28 = sadd.s32 4294967294, %s3046_s26   ;;  %s43_s29 = sadd.s32 1, %s3042_s25 }
  0x17   : > { %s271_s30 = sadd.s32 1, %s3034_s23  ;;  %p44_p5 = scmp.ge.s32.totalorder %s43_s29, 7 }
  0x18   : > { %p281_p6 = scmp.ne.s32.totalorder %s3034_s23, %s3030_s0  ;;  %p282_p7 = scmp.eq.s32.totalorder %s2426_s27, 6 }
  0x19   : > { %p287_p8 = scmp.ne.s32.totalorder %s3030_s0, %s3026_s22  ;;  %s4481_s29 = smov (%p44_p5, %s43_s29), 0 }
  0x1a   : > { %4427 = sst [smem:[#allocation14_spill]] %s4481_s29  ;;  %p3162_p9 = por %p282_p7, %p281_p6 }
  0x1b   : > { %p288_p10 = scmp.eq.s32.totalorder %s2427_s28, 6  ;;  %s266_s13 = ssub.s32 %s3042_s25, %s4481_s29 }
  0x1c   : > { %p2434_p11 = scmp.ge.s32.totalorder %s3046_s26, 1  ;;  %p269_p12 = scmp.eq.s32.totalorder %s266_s13, 0 }
  0x1d   : > { %p3169_p13 = por %p288_p10, %p287_p8  ;;  %p390_p0 = scmp.lt.s32.totalorder %s3046_s26, 8 }
  0x1e   : > { %s3175_s15 = scalar_select %p269_p12, %s3034_s23, %s271_s30  }
  0x1f   : > { %p391_p1 = pnand %p2434_p11, %p390_p0 }
  0x20   : > { %4430 = sst [smem:[#allocation15_spill]] %s3175_s15  ;;  %s3178_s16 = sand.u32 (!%p391_p1), 1, %s3030_s0  }
  0x21   : > { %394 = sbr.rel (%p391_p1) target bundleno = 1863 (0x747), region = 56  ;;  %p469_p2 = scmp.lt.s32.totalorder (!%p391_p1), %s3038_s24, 6 }
  0x22   : > { %s2435_s17 = sshll.u32 (!%p391_p1), %s3178_s16, 1  ;;  %p2438_p3 = scmp.ne.s32.totalorder (!%p391_p1), %s3038_s24, 0 }
  0x23   : > { %s3188_s28 = scalar_lea.vmem (!%p391_p1), [#allocation6], %s2435_s17  ;;  %s3190_s30 = scalar_lea.vmem (!%p391_p1), [#allocation8], %s2435_s17 }
  0x28   : > { %s470_s18 = scalar_select %p469_p2, %s3038_s24, 6 }
  0x29   : > { %488 = sbr.rel (%p2438_p3) target bundleno = 48 (0x30), region = 60  ;;  %v489_v0 = vld [vmem:[%s4410_s4] sm:$0xf] (!%p2438_p3)  ;;  %vm490_vm0 = vcmask (!%p2438_p3), 257024  }
  0x2a   : > { %s2437_s19 = sshll.u32 %s470_s18, 2  ;;  %v492_v1 = vld [vmem:[%s4411_s5] sm:$0xf] (!%p2438_p3)  ;;  %491 = vst.msk [vmem:[#allocation2] sm:$0xf] (!%p2438_p3), %vm490_vm0, %v489_v0 }
  0x2b   : > { %s3186_s27 = scalar_lea.vmem %s4409_s3, %s2437_s19  ;;  %493 = vst.msk [vmem:[#allocation3] sm:$0xf] (!%p2438_p3), %vm490_vm0, %v492_v1 }
  0x30 PF: > { %v2863_v2 = vld [vmem:[%s4412_s6 + $0x4] ss:$12 sps:$4 sm:$0xff]   ;;  %v2865_v3 = vld [vmem:[%s4412_s6] ss:$12 sps:$4 sm:$0xff]   ;;  %v3049_v4 = vmov 0   ;;  %vm4421_vm1 = vcmask 261120   ;;  %v4420_v11 = vlaneseq }
  0x31   : > { %573 = vmatprep.mubr.bf16.mxu0 %v3049_v4  ;;  %541 = vmatprep.subr.bf16.mxu0 %v2863_v2  ;;  %v2866_v5 = vld [vmem:[%s4412_s6 + $0x1c] ss:$12 sps:$4 sm:$0xff]   ;;  %v2868_v6 = vld [vmem:[%s4412_s6 + $0x18] ss:$12 sps:$4 sm:$0xff]   ;;  %v494_v7 = vld [vmem:[#allocation2] sm:$0xf] }
  0x32   : > { %542 = vmatpush1.bf16.msra.mxu0 %v2865_v3  ;;  %v3211_v8 = vpack.c.bf16 %v494_v7, %v494_v7  ;;  %v3050_v9 = vmov 1966171168   ;;  %v3216_v13 = vshrl.u32 %v4420_v11, 7  ;;  %v3221_v14 = vld [vmem:[%s4408_s2 + $0x10] sm:$0xff]   ;;  %v3226_v15 = vld [vmem:[%s4408_s2] sm:$0xff]   ;;  %v3231_v16 = vld [vmem:[%s4408_s2 + $0x18] sm:$0xff]  }
  0x33   : > { %543 = vmatprep.subr.bf16.mxu0 %v2866_v5  ;;  %v760_v10 = vunpack.c.l.s4 %v3050_v9  ;;  %v3236_v17 = vld [vmem:[%s4408_s2 + $0x8] sm:$0xff]   ;;  %v3244_v19 = vld [vmem:[%s4408_s2 + $0x20] sm:$0xff]   ;;  %v2502_v22 = vunpack.c.l.bf16 %v3221_v14  ;;  %v2494_v23 = vunpack.c.l.bf16 %v3226_v15  ;;  %v2503_v24 = vunpack.c.h.bf16 %v3221_v14  ;;  %v3270_v27 = vld [vmem:[%s4408_s2 + $0x50] sm:$0xff]   ;;  %s4424_s17 = smov 32   ;;  %s3054_s21 = smov 64  }
  0x34   : > { %v3249_v20 = vld [vmem:[%s4408_s2 + $0x28] sm:$0xff]   ;;  %v3252_v21 = vsub.s32 0, %v3216_v13  ;;  %v3260_v25 = vld [vmem:[%s4408_s2 + $0x80] sm:$0xff]   ;;  %v2495_v28 = vunpack.c.h.bf16 %v3226_v15  ;;  %v2506_v29 = vunpack.c.l.bf16 %v3231_v16  ;;  %v2498_v30 = vunpack.c.l.bf16 %v3236_v17  ;;  %v3279_v32 = vld [vmem:[%s4408_s2 + $0x30] sm:$0xff]   ;;  %s2190_s25 = sld [smem:[#allocation5 + %s3038_s24]]  ;;  %s4422_s15 = sshll.u32 %s3038_s24, 5 }
  0x35   : > { %v761_v12 = vunpack.c.0.s8 %v760_v10  ;;  %v3265_v26 = vld [vmem:[%s4408_s2 + $0x88] sm:$0xff]   ;;  %v2507_v31 = vunpack.c.h.bf16 %v3231_v16  ;;  %v2499_v33 = vunpack.c.h.bf16 %v3236_v17  ;;  %v2510_v34 = vunpack.c.l.bf16 %v3244_v19  ;;  %v3288_v37 = vld [vmem:[%s4408_s2 + $0x58] sm:$0xff]   ;;  %v3298_v39 = vld [vmem:[%s4408_s2 + $0x60] sm:$0xff]   ;;  %s4310_s19 = scalar_lea.hbm %s4417_s11, %s4422_s15  ;;  %s2262_s20 = sshll.u32 %s3190_s30, 4  ;;  %s4318_s20 = int_to_ptr.vmem [resolvable:$true] %s2262_s20 }
  0x36   : > { %544 = vmatpush1.bf16.msra.mxu0 %v2868_v6  ;;  %v2511_v35 = vunpack.c.h.bf16 %v3244_v19  ;;  %v2514_v36 = vunpack.c.l.bf16 %v3249_v20  ;;  %v3293_v38 = vld [vmem:[%s4408_s2 + $0x38] sm:$0xff]   ;;  %v2558_v41 = vunpack.c.l.bf16 %v3260_v25  ;;  %v2562_v42 = vunpack.c.l.bf16 %v3265_v26  ;;  %v3307_v45 = vld [vmem:[%s4408_s2 + $0x40] sm:$0xff]   ;;  %v3318_v51 = vld [vmem:[%s4408_s2 + $0x68] sm:$0xff]   ;;  %s2234_s29 = scalar_lea.sflag [#allocation9], %s3178_s16 }
  0x37   : > { %v3239_v18 = vsub.s32 %v761_v12, %v3216_v13  ;;  %v2534_v43 = vunpack.c.l.bf16 %v3270_v27  ;;  %v2515_v44 = vunpack.c.h.bf16 %v3249_v20  ;;  %v2535_v48 = vunpack.c.h.bf16 %v3270_v27  ;;  %v3323_v52 = vld [vmem:[%s4408_s2 + $0x48] sm:$0xff]   ;;  %v3332_v58 = vld [vmem:[%s4408_s2 + $0x70] sm:$0xff]   ;;  %v3340_v0 = vld [vmem:[%s4408_s2 + $0x78] sm:$0xff]  }
  0x38   : > { %v2518_v49 = vunpack.c.l.bf16 %v3279_v32  ;;  %v2519_v50 = vunpack.c.h.bf16 %v3279_v32  ;;  %v2538_v54 = vunpack.c.l.bf16 %v3288_v37  ;;  %v2539_v55 = vunpack.c.h.bf16 %v3288_v37  ;;  %v3349_v5 = vld [vmem:[%s4408_s2 + $0x90] sm:$0xff]   ;;  %v3371_v11 = vld [vmem:[%s4414_s8] ss:$0 sm:$0xff]  ;;  %v3385_v4 = vld [vmem:[%s4408_s2 + $0x98] sm:$0xff]  }
  0x39   : > { %2445 = vmatmul.mubr.msk.bf16.vlgmr.msra.gmra.mrb[0].mxu0 %vm4421_vm1, %v3211_v8  ;;  %v2522_v56 = vunpack.c.l.bf16 %v3293_v38  ;;  %v2542_v57 = vunpack.c.l.bf16 %v3298_v39  ;;  %v2543_v62 = vunpack.c.h.bf16 %v3298_v39  ;;  %v3401_v9 = vld [vmem:[%s4408_s2 + $0xa0] sm:$0xff]   ;;  %v3553_v39 = vld [vmem:[%s4408_s2 + $0xf0] sm:$0xff]   ;;  %vm1270_vm2 = vcmask 130112  }
  0x3a   : > { %vm1277_vm3 = vcmask 195712   ;;  %vm1284_vm4 = vcmask 261312   ;;  %vm1291_vm5 = vcmask 326912   ;;  %vm1298_vm6 = vcmask 392512  }
  0x3b   : > { %vm1305_vm7 = vcmask 458112   ;;  %vm1312_vm8 = vcmask 523712   ;;  %vm1319_vm9 = vcmask 589312   ;;  %vm1326_vm10 = vcmask 654912  }
  0x3c   : > { %vm1333_vm11 = vcmask 720512   ;;  %vm1340_vm12 = vcmask 786112   ;;  %vm1347_vm13 = vcmask 851712   ;;  %vm1354_vm14 = vcmask 917312  }
  0x3d   : > { %vm1361_vm15 = vcmask 982912   ;;  %vm1368_vm0 = vcmask 1048512  }
 0x10c   : > { %v575_v40 = vpop.f32.mrb[0].mxu0 }
 0x10d   : > { %v765_v46 = vrot.slane %v575_v40, %v3239_v18  ;;  %v3310_v47 = vpop.f32.mrb[1].mxu0 }
 0x10e   : > { %v579_v53 = vpop.f32.mrb[2].mxu0 }
 0x10f   : > { %v766_v59 = vcombine.high %v765_v46, %v765_v46  ;;  %v773_v60 = vrot.slane %v765_v46, %v3239_v18  ;;  %v580_v61 = vpop.f32.mrb[3].mxu0 }
 0x111   : > { %v3352_v6 = vrot.slane %v766_v59, %v3239_v18  ;;  %v3355_v7 = vrot.slane %v773_v60, %v3252_v21  ;;  %v781_v61 = vcombine.high %v773_v60, %v773_v60 }
 0x113   : > { %v782_v46 = vcombine.high %v3352_v6, %v3352_v6  ;;  %v807_v53 = vadd.f32 %v2502_v22, %v3355_v7  ;;  %v803_v14 = vadd.f32 %v2494_v23, %v3355_v7  ;;  %v808_v12 = vadd.f32 %v2503_v24, %v3355_v7  ;;  %v3380_v22 = vld [vmem:[%s4408_s2 + $0xc0] sm:$0xff]  }
 0x114   : > { %v804_v10 = vadd.f32 %v2495_v28, %v3355_v7  ;;  %v809_v24 = vadd.f32 %v2506_v29, %v3355_v7  ;;  %v3396_v28 = vld [vmem:[%s4408_s2 + $0xc8] sm:$0xff]   ;;  %v810_v29 = vadd.f32 %v2507_v31, %v3355_v7  ;;  %v3422_v16 = vrot.slane %v781_v61, %v3252_v21 }
 0x115   : > { %v3388_v59 = vrot.slane %v782_v46, %v3252_v21  ;;  %v871_v23 = vmax.f32 %v807_v53, 0.0  ;;  %v867_v40 = vmax.f32 %v803_v14, 0.0  ;;  %v872_v60 = vmax.f32 %v808_v12, 0.0 }
 0x116   : > { %v868_v15 = vmax.f32 %v804_v10, 0.0  ;;  %v805_v46 = vadd.f32 %v2498_v30, %v3355_v7  ;;  %v3419_v30 = vld [vmem:[%s4408_s2 + $0xa8] sm:$0xff]   ;;  %v873_v2 = vmax.f32 %v809_v24, 0.0  ;;  %v806_v61 = vadd.f32 %v2499_v33, %v3355_v7  ;;  %v3444_v24 = vld [vmem:[%s4408_s2 + $0xb0] sm:$0xff]  }
 0x117   : > { %v942_v53 = vmul.f32 %v3371_v11, %v871_v23  ;;  %v938_v1 = vmul.f32 %v3371_v11, %v867_v40  ;;  %v943_v23 = vmul.f32 %v3371_v11, %v872_v60  ;;  %v3429_v40 = vld [vmem:[%s4408_s2 + $0xd0] sm:$0xff]   ;;  %v3439_v60 = vld [vmem:[%s4408_s2 + $0xd8] sm:$0xff]   ;;  %v811_v17 = vadd.f32 %v2510_v34, %v3355_v7 }
 0x118   : > { %v939_v10 = vmul.f32 %v3371_v11, %v868_v15  ;;  %v869_v14 = vmax.f32 %v805_v46, 0.0  ;;  %v3462_v46 = vld [vmem:[%s4408_s2 + $0xe0] sm:$0xff]   ;;  %v870_v33 = vmax.f32 %v806_v61, 0.0  ;;  %v3476_v15 = vrot.slane %v3352_v6, %v3252_v21 }
 0x119   : > { %v1014_v31 = vsel %vm4421_vm1, %v942_v53, 0.0  ;;  %v1002_v12 = vsel %vm4421_vm1, %v938_v1, 0.0  ;;  %v874_v53 = vmax.f32 %v810_v29, 0.0  ;;  %v2595_v1 = vunpack.c.h.bf16 %v3396_v28 }
 0x11a   : > { %1015 = vadd.xlane.f32.xlu1 %v1014_v31  ;;  %1003 = vadd.xlane.f32.xlu0 %v1002_v12  ;;  %v1017_v63 = vsel %vm4421_vm1, %v943_v23, 0.0  ;;  %v944_v29 = vmul.f32 %v3371_v11, %v873_v2  ;;  %v1005_v34 = vsel %vm4421_vm1, %v939_v10, 0.0  ;;  %v940_v31 = vmul.f32 %v3371_v11, %v869_v14  ;;  %v3472_v2 = vld [vmem:[%s4408_s2 + $0xe8] sm:$0xff]  }
 0x11b   : > { %v835_v23 = vadd.f32 %v2558_v41, %v3422_v16  ;;  %v812_v14 = vadd.f32 %v2511_v35, %v3355_v7  ;;  %v875_v61 = vmax.f32 %v811_v17, 0.0  ;;  %v837_v41 = vadd.f32 %v2562_v42, %v3422_v16 }
 0x11c   : > { %v2603_v3 = vunpack.c.h.bf16 %v3439_v60  ;;  %v1020_v21 = vsel %vm4421_vm1, %v944_v29, 0.0  ;;  %v2607_v6 = vunpack.c.h.bf16 %v3462_v46  ;;  %v1008_v35 = vsel %vm4421_vm1, %v940_v31, 0.0 }
 0x11d   : > { %v941_v17 = vmul.f32 %v3371_v11, %v870_v33  ;;  %v2523_v42 = vunpack.c.h.bf16 %v3293_v38  ;;  %v876_v12 = vmax.f32 %v812_v14, 0.0  ;;  %v813_v29 = vadd.f32 %v2514_v36, %v3355_v7 }
 0x11e   : > { %1018 = vadd.xlane.f32.xlu1 %v1017_v63  ;;  %1006 = vadd.xlane.f32.xlu0 %v1005_v34  ;;  %v945_v63 = vmul.f32 %v3371_v11, %v874_v53  ;;  %v2610_v53 = vunpack.c.l.bf16 %v3472_v2  ;;  %v899_v34 = vmax.f32 %v835_v23, 0.0  ;;  %v823_v19 = vadd.f32 %v2534_v43, %v3476_v15 }
 0x11f   : > { %v901_v31 = vmax.f32 %v837_v41, 0.0  ;;  %v814_v33 = vadd.f32 %v2515_v44, %v3355_v7  ;;  %v824_v23 = vadd.f32 %v2535_v48, %v3476_v15  ;;  %v825_v36 = vadd.f32 %v2538_v54, %v3476_v15 }
 0x120   : > { %v1023_v10 = vsel %vm4421_vm1, %v945_v63, 0.0  ;;  %v815_v63 = vadd.f32 %v2518_v49, %v3355_v7  ;;  %v816_v43 = vadd.f32 %v2519_v50, %v3355_v7  ;;  %v826_v20 = vadd.f32 %v2539_v55, %v3476_v15 }
 0x121   : > { %v1011_v27 = vsel %vm4421_vm1, %v941_v17, 0.0  ;;  %v970_v44 = vmul.f32 %v3371_v11, %v899_v34  ;;  %v817_v48 = vadd.f32 %v2522_v56, %v3355_v7  ;;  %v827_v49 = vadd.f32 %v2542_v57, %v3476_v15  ;;  %v3536_v56 = vld [vmem:[%s4408_s2 + $0xb8] sm:$0xff]  }
 0x122   : > { %1021 = vadd.xlane.f32.xlu1 %v1020_v21  ;;  %1009 = vadd.xlane.f32.xlu0 %v1008_v35  ;;  %v946_v21 = vmul.f32 %v3371_v11, %v875_v61  ;;  %v947_v32 = vmul.f32 %v3371_v11, %v876_v12  ;;  %v877_v50 = vmax.f32 %v813_v29, 0.0  ;;  %v887_v54 = vmax.f32 %v823_v19, 0.0 }
 0x123   : > { %v2611_v37 = vunpack.c.h.bf16 %v3472_v2  ;;  %v972_v14 = vmul.f32 %v3371_v11, %v901_v31  ;;  %v888_v61 = vmax.f32 %v824_v23, 0.0  ;;  %v879_v41 = vmax.f32 %v815_v63, 0.0 }
 0x124   : > { %v1026_v55 = vsel %vm4421_vm1, %v946_v21, 0.0  ;;  %v889_v57 = vmax.f32 %v825_v36, 0.0  ;;  %v880_v35 = vmax.f32 %v816_v43, 0.0  ;;  %v890_v17 = vmax.f32 %v826_v20, 0.0 }
 0x125   : > { %v1098_v12 = vsel %vm4421_vm1, %v970_v44, 0.0  ;;  %v881_v19 = vmax.f32 %v817_v48, 0.0  ;;  %v891_v34 = vmax.f32 %v827_v49, 0.0  ;;  %v828_v29 = vadd.f32 %v2543_v62, %v3476_v15  ;;  %v3558_v62 = vld [vmem:[%s4408_s2 + $0xf8] sm:$0xff]  }
 0x126   : > { %1024 = vadd.xlane.f32.xlu1 %v1023_v10  ;;  %1012 = vadd.xlane.f32.xlu0 %v1011_v27  ;;  %v878_v10 = vmax.f32 %v814_v33, 0.0  ;;  %v948_v21 = vmul.f32 %v3371_v11, %v877_v50  ;;  %v958_v31 = vmul.f32 %v3371_v11, %v887_v54  ;;  %v1029_v63 = vsel %vm4421_vm1, %v947_v32, 0.0 }
 0x127   : > { %v1104_v36 = vsel %vm4421_vm1, %v972_v14, 0.0  ;;  %v959_v20 = vmul.f32 %v3371_v11, %v888_v61  ;;  %v950_v27 = vmul.f32 %v3371_v11, %v879_v41  ;;  %v960_v44 = vmul.f32 %v3371_v11, %v889_v57 }
 0x128   : > { %v949_v43 = vmul.f32 %v3371_v11, %v878_v10  ;;  %v951_v48 = vmul.f32 %v3371_v11, %v880_v35  ;;  %v961_v49 = vmul.f32 %v3371_v11, %v890_v17  ;;  %v952_v32 = vmul.f32 %v3371_v11, %v881_v19 }
 0x129   : > { %v962_v50 = vmul.f32 %v3371_v11, %v891_v34  ;;  %v892_v54 = vmax.f32 %v828_v29, 0.0  ;;  %v1032_v35 = vsel %vm4421_vm1, %v948_v21, 0.0  ;;  %v1062_v17 = vsel %vm4421_vm1, %v958_v31, 0.0 }
 0x12a   : > { %1027 = vadd.xlane.f32.xlu1 %v1026_v55  ;;  %1099 = vadd.xlane.f32.xlu0 %v1098_v12  ;;  %v4431_v55 = vunpack.c.l.bf16 %v3307_v45  ;;  %v1035_v12 = vsel %vm4421_vm1, %v949_v43, 0.0  ;;  %v1065_v19 = vsel %vm4421_vm1, %v959_v20, 0.0  ;;  %v1038_v34 = vsel %vm4421_vm1, %v950_v27, 0.0 }
 0x12b   : > { %v1068_v29 = vsel %vm4421_vm1, %v960_v44, 0.0  ;;  %v3585_v21 = vsel %vm4421_vm1, %v962_v50, 0.0  ;;  %v963_v31 = vmul.f32 %v3371_v11, %v892_v54  ;;  %v4432_v20 = vunpack.c.l.bf16 %v3318_v51 }
 0x12c   : > { %v819_v14 = vadd.f32 %v4431_v55, %v3476_v15  ;;  %v3582_v55 = vsel %vm4421_vm1, %v952_v32, 0.0  ;;  %v4433_v44 = vunpack.c.h.bf16 %v3307_v45  ;;  %v4435_v50 = vunpack.c.l.bf16 %v3340_v0 }
 0x12d   : > { %v3591_v27 = vadd.f32 %v4432_v20, %v3476_v15  ;;  %v4438_v45 = vunpack.c.l.bf16 %v3349_v5  ;;  %v4440_v57 = vunpack.c.l.bf16 %v3323_v52  ;;  %v3632_v61 = vsel %vm4421_vm1, %v963_v31, 0.0 }
 0x12e   : > { %1030 = vadd.xlane.f32.xlu1 %v1029_v63  ;;  %1105 = vadd.xlane.f32.xlu0 %v1104_v36  ;;  %v1041_v63 = vsel %vm4421_vm1, %v951_v48, 0.0  ;;  %v1071_v36 = vsel %vm4421_vm1, %v961_v49, 0.0  ;;  %v883_v43 = vmax.f32 %v819_v14, 0.0  ;;  %v3596_v48 = vadd.f32 %v4433_v44, %v3476_v15 }
 0x12f   : > { %v4434_v49 = vunpack.c.h.bf16 %v3318_v51  ;;  %v833_v54 = vadd.f32 %v4435_v50, %v3476_v15  ;;  %v4436_v14 = vunpack.c.h.bf16 %v3265_v26  ;;  %v839_v44 = vadd.f32 %v4438_v45, %v3422_v16 }
 0x130   : > { %v4439_v51 = vunpack.c.h.bf16 %v3349_v5  ;;  %v3621_v50 = vadd.f32 %v4440_v57, %v3476_v15  ;;  %v4441_v26 = vunpack.c.l.bf16 %v3332_v58  ;;  %v954_v31 = vmul.f32 %v3371_v11, %v883_v43 }
 0x131   : > { %v3601_v32 = vadd.f32 %v4434_v49, %v3476_v15  ;;  %v903_v5 = vmax.f32 %v839_v44, 0.0  ;;  %v4444_v44 = vunpack.c.l.bf16 %v3396_v28  ;;  %v4450_v28 = vunpack.c.h.bf16 %v3429_v40 }
 0x132   : > { %1033 = vadd.xlane.f32.xlu1 %v1032_v35  ;;  %1063 = vadd.xlane.f32.xlu0 %v1062_v17  ;;  %v838_v35 = vadd.f32 %v4436_v14, %v3422_v16  ;;  %v4437_v17 = vunpack.c.h.bf16 %v3340_v0  ;;  %v840_v49 = vadd.f32 %v4439_v51, %v3422_v16  ;;  %v3626_v14 = vadd.f32 %v4441_v26, %v3476_v15 }
 0x133   : > { %v897_v0 = vmax.f32 %v833_v54, 0.0  ;;  %v4443_v54 = vunpack.c.l.bf16 %v3385_v4  ;;  %v4463_v38 = vunpack.c.h.bf16 %v3536_v56 }
 0x134   : > { %v834_v20 = vadd.f32 %v4437_v17, %v3476_v15  ;;  %v4442_v17 = vunpack.c.h.bf16 %v3380_v22  ;;  %v902_v45 = vmax.f32 %v838_v35, 0.0  ;;  %v904_v51 = vmax.f32 %v840_v49, 0.0 }
 0x135   : > { %v3635_v57 = vmul.f32 %v3371_v11, %v897_v0  ;;  %v841_v26 = vadd.f32 %v4443_v54, %v3422_v16  ;;  %v3647_v35 = vmul.f32 %v3371_v11, %v903_v5  ;;  %v853_v49 = vadd.f32 %v4444_v44, %v3388_v59 }
 0x136   : > { %v852_v41 = vadd.f32 %v4442_v17, %v3388_v59  ;;  %1036 = vadd.xlane.f32.xlu1 %v1035_v12  ;;  %v898_v23 = vmax.f32 %v834_v20, 0.0  ;;  %1066 = vadd.xlane.f32.xlu0 %v1065_v19  ;;  %v3641_v10 = vmul.f32 %v3371_v11, %v902_v45  ;;  %v3650_v19 = vmul.f32 %v3371_v11, %v904_v51 }
 0x137   : > { %v905_v20 = vmax.f32 %v841_v26, 0.0  ;;  %v884_v0 = vmax.f32 %v3596_v48, 0.0  ;;  %v894_v17 = vmax.f32 %v3601_v32, 0.0  ;;  %v4445_v45 = vunpack.c.h.bf16 %v3260_v25 }
 0x138   : > { %v916_v33 = vmax.f32 %v852_v41, 0.0  ;;  %v3644_v12 = vmul.f32 %v3371_v11, %v898_v23  ;;  %v893_v23 = vmax.f32 %v3591_v27, 0.0  ;;  %v917_v51 = vmax.f32 %v853_v49, 0.0 }
 0x139   : > { %v3665_v5 = vadd.f32 %v4445_v45, %v3422_v16  ;;  %v3669_v43 = vmul.f32 %v3371_v11, %v905_v20  ;;  %v854_v48 = vadd.f32 %v2595_v1, %v3388_v59  ;;  %v4447_v25 = vunpack.c.l.bf16 %v3401_v9 }
 0x13a   : > { %v3654_v41 = vmul.f32 %v3371_v11, %v916_v33  ;;  %1039 = vadd.xlane.f32.xlu1 %v1038_v34  ;;  %1069 = vadd.xlane.f32.xlu0 %v1068_v29  ;;  %v885_v33 = vmax.f32 %v3621_v50, 0.0  ;;  %v4446_v34 = vunpack.c.h.bf16 %v3385_v4  ;;  %v4448_v29 = vunpack.c.l.bf16 %v3429_v40 }
 0x13b   : > { %v843_v32 = vadd.f32 %v4447_v25, %v3422_v16  ;;  %v4449_v54 = vunpack.c.h.bf16 %v3401_v9  ;;  %v895_v20 = vmax.f32 %v3626_v14, 0.0  ;;  %v3688_v4 = vmul.f32 %v3371_v11, %v917_v51 }
 0x13c   : > { %v842_v27 = vadd.f32 %v4446_v34, %v3422_v16  ;;  %v855_v50 = vadd.f32 %v4448_v29, %v3388_v59  ;;  %v856_v1 = vadd.f32 %v4450_v28, %v3388_v59  ;;  %v918_v49 = vmax.f32 %v854_v48, 0.0 }
 0x13d   : > { %v844_v26 = vadd.f32 %v4449_v54, %v3422_v16  ;;  %v907_v45 = vmax.f32 %v843_v32, 0.0  ;;  %v1050_v29 = vsel %vm4421_vm1, %v954_v31, 0.0  ;;  %v4451_v51 = vunpack.c.l.bf16 %v3419_v30 }
 0x13e   : > { %v906_v44 = vmax.f32 %v842_v27, 0.0  ;;  %1042 = vadd.xlane.f32.xlu1 %v1041_v63  ;;  %v919_v34 = vmax.f32 %v855_v50, 0.0  ;;  %1072 = vadd.xlane.f32.xlu0 %v1071_v36  ;;  %v920_v14 = vmax.f32 %v856_v1, 0.0  ;;  %v3701_v54 = vmul.f32 %v3371_v11, %v918_v49 }
 0x13f   : > { %v908_v25 = vmax.f32 %v844_v26, 0.0  ;;  %v845_v27 = vadd.f32 %v4451_v51, %v3422_v16  ;;  %v3704_v40 = vmul.f32 %v3371_v11, %v907_v45  ;;  %v964_v31 = vmul.f32 %v3371_v11, %v893_v23 }
 0x140   : > { %v3695_v9 = vmul.f32 %v3371_v11, %v906_v44  ;;  %v3707_v63 = vmul.f32 %v3371_v11, %v919_v34  ;;  %v3714_v48 = vmul.f32 %v3371_v11, %v920_v14  ;;  %v4452_v50 = vunpack.c.l.bf16 %v3439_v60 }
 0x141   : > { %v3710_v36 = vmul.f32 %v3371_v11, %v908_v25  ;;  %v909_v32 = vmax.f32 %v845_v27, 0.0  ;;  %v955_v44 = vmul.f32 %v3371_v11, %v884_v0  ;;  %v965_v28 = vmul.f32 %v3371_v11, %v894_v17 }
 0x142   : > { %v857_v26 = vadd.f32 %v4452_v50, %v3388_v59  ;;  %1045 = vadd.xlane.f32.xlu1 %v3582_v55  ;;  %v900_v1 = vmax.f32 %v3665_v5, 0.0  ;;  %v4453_v49 = vunpack.c.h.bf16 %v3332_v58  ;;  %1075 = vadd.xlane.f32.xlu0 %v3585_v21  ;;  %v956_v45 = vmul.f32 %v3371_v11, %v885_v33 }
 0x143   : > { %v3731_v34 = vmul.f32 %v3371_v11, %v909_v32  ;;  %v4454_v55 = vunpack.c.h.bf16 %v3419_v30  ;;  %v858_v17 = vadd.f32 %v2603_v3, %v3388_v59  ;;  %v4455_v58 = vunpack.c.l.bf16 %v3444_v24 }
 0x144   : > { %v3726_v23 = vadd.f32 %v4453_v49, %v3476_v15  ;;  %v921_v25 = vmax.f32 %v857_v26, 0.0  ;;  %v4456_v21 = vunpack.c.l.bf16 %v3462_v46  ;;  %v4457_v14 = vunpack.c.h.bf16 %v3444_v24 }
 0x145   : > { %v846_v0 = vadd.f32 %v4454_v55, %v3422_v16  ;;  %v847_v5 = vadd.f32 %v4455_v58, %v3422_v16  ;;  %v966_v27 = vmul.f32 %v3371_v11, %v895_v20  ;;  %v860_v3 = vadd.f32 %v2607_v6, %v3388_v59 }
 0x146   : > { %v859_v33 = vadd.f32 %v4456_v21, %v3388_v59  ;;  %v848_v51 = vadd.f32 %v4457_v14, %v3422_v16  ;;  %v3750_v30 = vmul.f32 %v3371_v11, %v921_v25  ;;  %1051 = vadd.xlane.f32.xlu1 %v1050_v29  ;;  %v922_v60 = vmax.f32 %v858_v17, 0.0  ;;  %1078 = vadd.xlane.f32.xlu0 %v3632_v61 }
 0x147   : > { %v910_v32 = vmax.f32 %v846_v0, 0.0  ;;  %v911_v50 = vmax.f32 %v847_v5, 0.0  ;;  %v4458_v24 = vunpack.c.h.bf16 %v3323_v52  ;;  %v924_v25 = vmax.f32 %v860_v3, 0.0 }
 0x148   : > { %v923_v26 = vmax.f32 %v859_v33, 0.0  ;;  %v912_v49 = vmax.f32 %v848_v51, 0.0  ;;  %v861_v46 = vadd.f32 %v2610_v53, %v3388_v59  ;;  %v3766_v6 = vmul.f32 %v3371_v11, %v922_v60 }
 0x149   : > { %v822_v55 = vadd.f32 %v4458_v24, %v3476_v15  ;;  %v3760_v20 = vmul.f32 %v3371_v11, %v910_v32  ;;  %v3769_v29 = vmul.f32 %v3371_v11, %v911_v50  ;;  %v1053_v15 = vsel %vm4421_vm1, %v955_v44, 0.0 }
 0x14a   : > { %v3772_v61 = vmul.f32 %v3371_v11, %v923_v26  ;;  %v3775_v52 = vmul.f32 %v3371_v11, %v912_v49  ;;  %v3779_v0 = vmul.f32 %v3371_v11, %v924_v25  ;;  %v925_v17 = vmax.f32 %v861_v46, 0.0  ;;  %1054 = vadd.xlane.f32.xlu1 %v1053_v15 }
 0x14b   : > { %v4459_v53 = vunpack.c.l.bf16 %v3380_v22  ;;  %v1080_v5 = vsel %vm4421_vm1, %v964_v31, 0.0  ;;  %v1083_v21 = vsel %vm4421_vm1, %v965_v28, 0.0  ;;  %v971_v33 = vmul.f32 %v3371_v11, %v900_v1 }
 0x14c   : > { %v896_v14 = vmax.f32 %v3726_v23, 0.0  ;;  %1081 = vadd.xlane.f32.xlu0 %v1080_v5  ;;  %v1056_v44 = vsel %vm4421_vm1, %v956_v45, 0.0  ;;  %v3790_v51 = vmul.f32 %v3371_v11, %v925_v17  ;;  %v862_v22 = vadd.f32 %v2611_v37, %v3388_v59 }
 0x14d   : > { %v851_v58 = vadd.f32 %v4459_v53, %v3388_v59  ;;  %v818_v31 = vadd.f32 %v2523_v42, %v3355_v7  ;;  %v4460_v28 = vunpack.c.l.bf16 %v3553_v39  ;;  %v4461_v23 = vunpack.c.l.bf16 %v3536_v56 }
 0x14e   : > { %v4462_v3 = vunpack.c.h.bf16 %v3553_v39  ;;  %v886_v50 = vmax.f32 %v822_v55, 0.0  ;;  %v926_v37 = vmax.f32 %v862_v22, 0.0  ;;  %v850_v7 = vadd.f32 %v4463_v38, %v3422_v16  ;;  %1057 = vadd.xlane.f32.xlu1 %v1056_v44 }
 0x14f   : > { %v915_v32 = vmax.f32 %v851_v58, 0.0  ;;  %v863_v1 = vadd.f32 %v4460_v28, %v3388_v59  ;;  %v849_v45 = vadd.f32 %v4461_v23, %v3422_v16  ;;  %v882_v42 = vmax.f32 %v818_v31, 0.0 }
 0x150   : > { %v864_v60 = vadd.f32 %v4462_v3, %v3388_v59  ;;  %1084 = vadd.xlane.f32.xlu0 %v1083_v21  ;;  %v1101_v25 = vsel %vm4421_vm1, %v971_v33, 0.0  ;;  %v3815_v39 = vmul.f32 %v3371_v11, %v926_v37  ;;  %v914_v55 = vmax.f32 %v850_v7, 0.0 }
 0x151   : > { %v3808_v2 = vmul.f32 %v3371_v11, %v915_v32  ;;  %v927_v26 = vmax.f32 %v863_v1, 0.0  ;;  %v913_v49 = vmax.f32 %v849_v45, 0.0  ;;  %v4464_v46 = vunpack.c.l.bf16 %v3558_v62 }
 0x152   : > { %v928_v24 = vmax.f32 %v864_v60, 0.0  ;;  %v3821_v17 = vmul.f32 %v3371_v11, %v882_v42  ;;  %v957_v58 = vmul.f32 %v3371_v11, %v886_v50  ;;  %v3834_v5 = vmul.f32 %v3371_v11, %v914_v55  ;;  %1102 = vadd.xlane.f32.xlu1 %v1101_v25 }
 0x153   : > { %v865_v15 = vadd.f32 %v4464_v46, %v3388_v59  ;;  %v3824_v16 = vmul.f32 %v3371_v11, %v927_v26  ;;  %v3827_v56 = vmul.f32 %v3371_v11, %v913_v49  ;;  %v4465_v33 = vunpack.c.h.bf16 %v3558_v62 }
 0x154   : > { %v3830_v53 = vmul.f32 %v3371_v11, %v928_v24  ;;  %v1086_v32 = vsel %vm4421_vm1, %v966_v27, 0.0  ;;  %v967_v22 = vmul.f32 %v3371_v11, %v896_v14  ;;  %v1059_v1 = vsel %vm4421_vm1, %v957_v58, 0.0 }
 0x155   : > { %v929_v21 = vmax.f32 %v865_v15, 0.0  ;;  %v866_v44 = vadd.f32 %v4465_v33, %v3388_v59  ;;  %1087 = vadd.xlane.f32.xlu0 %v1086_v32  ;;  %v1107_v59 = vsel %vm4421_vm1, %v3641_v10, 0.0  ;;  %v1092_v62 = vsel %vm4421_vm1, %v3635_v57, 0.0 }
 0x156   : > { %v1089_v45 = vsel %vm4421_vm1, %v967_v22, 0.0  ;;  %1060 = vadd.xlane.f32.xlu1 %v1059_v1  ;;  %v1110_v27 = vsel %vm4421_vm1, %v3647_v35, 0.0  ;;  %v1095_v14 = vsel %vm4421_vm1, %v3644_v12, 0.0  ;;  %v1149_v10 = vsel %vm4421_vm1, %v3654_v41, 0.0 }
 0x157   : > { %v3842_v31 = vmul.f32 %v3371_v11, %v929_v21  ;;  %v930_v28 = vmax.f32 %v866_v44, 0.0  ;;  %v1116_v57 = vsel %vm4421_vm1, %v3669_v43, 0.0  ;;  %v1152_v35 = vsel %vm4421_vm1, %v3688_v4, 0.0 }
 0x158   : > { %v1119_v12 = vsel %vm4421_vm1, %v3695_v9, 0.0  ;;  %v1122_v41 = vsel %vm4421_vm1, %v3704_v40, 0.0  ;;  %v1158_v43 = vsel %vm4421_vm1, %v3707_v63, 0.0  ;;  %v1125_v4 = vsel %vm4421_vm1, %v3710_v36, 0.0 }
 0x159   : > { %v3846_v23 = vmul.f32 %v3371_v11, %v930_v28  ;;  %1090 = vadd.xlane.f32.xlu0 %v1089_v45  ;;  %v1113_v11 = vsel %vm4421_vm1, %v3650_v19, 0.0  ;;  %v1155_v19 = vsel %vm4421_vm1, %v3701_v54, 0.0  ;;  %v1161_v9 = vsel %vm4421_vm1, %v3714_v48, 0.0 }
 0x15a   : > { %1108 = vadd.xlane.f32.xlu1 %v1107_v59  ;;  %v1128_v54 = vsel %vm4421_vm1, %v3731_v34, 0.0  ;;  %v1164_v40 = vsel %vm4421_vm1, %v3750_v30, 0.0  ;;  %v1131_v63 = vsel %vm4421_vm1, %v3760_v20, 0.0  ;;  %v1167_v36 = vsel %vm4421_vm1, %v3766_v6, 0.0 }
 0x15b   : > { %v1134_v48 = vsel %vm4421_vm1, %v3769_v29, 0.0  ;;  %v1170_v34 = vsel %vm4421_vm1, %v3772_v61, 0.0  ;;  %v1137_v30 = vsel %vm4421_vm1, %v3775_v52, 0.0  ;;  %v1173_v20 = vsel %vm4421_vm1, %v3779_v0, 0.0 }
 0x15c   : > { %v1146_v6 = vsel %vm4421_vm1, %v3808_v2, 0.0  ;;  %v1176_v3 = vsel %vm4421_vm1, %v3790_v51, 0.0  ;;  %v1047_v29 = vsel %vm4421_vm1, %v3821_v17, 0.0  ;;  %v1179_v61 = vsel %vm4421_vm1, %v3815_v39, 0.0 }
 0x15d   : > { %1093 = vadd.xlane.f32.xlu0 %v1092_v62  ;;  %v1140_v52 = vsel %vm4421_vm1, %v3827_v56, 0.0  ;;  %v1182_v0 = vsel %vm4421_vm1, %v3824_v16, 0.0  ;;  %v1143_v51 = vsel %vm4421_vm1, %v3834_v5, 0.0  ;;  %v1185_v60 = vsel %vm4421_vm1, %v3830_v53, 0.0 }
 0x15e   : > { %1111 = vadd.xlane.f32.xlu1 %v1110_v27  ;;  %v1191_v50 = vsel %vm4421_vm1, %v3846_v23, 0.0  ;;  %v1188_v2 = vsel %vm4421_vm1, %v3842_v31, 0.0  ;;  %v4466_v37 = vlaneseq  ;;  %vm1607_vm1 = vcmask 1041409  }
 0x160   : > { %v3914_v38 = vand.u32 127, %v4466_v37 }
 0x161   : > { %1096 = vadd.xlane.f32.xlu0 %v1095_v14 }
 0x162   : > { %1114 = vadd.xlane.f32.xlu1 %v1113_v11  ;;  %v1265_v7 = vadd.s32 4294967288, %v3914_v38  ;;  %v3919_v49 = vsub.s32 %v3914_v38, %v3216_v13  ;;  %v1272_v25 = vadd.s32 4294967280, %v3914_v38  ;;  %v1279_v16 = vadd.s32 4294967272, %v3914_v38 }
 0x163   : > { %v1286_v56 = vadd.s32 4294967264, %v3914_v38  ;;  %v1293_v53 = vadd.s32 4294967256, %v3914_v38  ;;  %v1300_v21 = vadd.s32 4294967248, %v3914_v38  ;;  %v1314_v44 = vadd.s32 4294967232, %v3914_v38 }
 0x164   : > { %v3922_v24 = vsub.s32 %v1265_v7, %v3216_v13  ;;  %v3928_v17 = vsub.s32 %v1272_v25, %v3216_v13  ;;  %v1307_v22 = vadd.s32 4294967240, %v3914_v38  ;;  %v3939_v31 = vsub.s32 %v1279_v16, %v3216_v13 }
 0x165   : > { %1150 = vadd.xlane.f32.xlu0 %v1149_v10  ;;  %v3942_v28 = vsub.s32 %v1286_v56, %v3216_v13  ;;  %v3945_v1 = vsub.s32 %v1293_v53, %v3216_v13  ;;  %v3949_v59 = vsub.s32 %v1300_v21, %v3216_v13  ;;  %v3952_v27 = vsub.s32 %v1314_v44, %v3216_v13 }
 0x166   : > { %1117 = vadd.xlane.f32.xlu1 %v1116_v57  ;;  %v1321_v14 = vadd.s32 4294967224, %v3914_v38  ;;  %v3956_v11 = vsub.s32 %v1307_v22, %v3216_v13  ;;  %v1356_v53 = vadd.s32 4294967184, %v3914_v38 }
 0x168   : > { %v4002_v44 = vsub.s32 %v1356_v53, %v3216_v13 }
 0x169   : > { %1153 = vadd.xlane.f32.xlu0 %v1152_v35 }
 0x16a   : > { %1120 = vadd.xlane.f32.xlu1 %v1119_v12 }
 0x16d   : > { %1156 = vadd.xlane.f32.xlu0 %v1155_v19 }
 0x16e   : > { %1123 = vadd.xlane.f32.xlu1 %v1122_v41  ;;  %v1328_v41 = vadd.s32 4294967216, %v3914_v38 }
 0x171   : > { %1159 = vadd.xlane.f32.xlu0 %v1158_v43 }
 0x172   : > { %1126 = vadd.xlane.f32.xlu1 %v1125_v4 }
 0x175   : > { %1162 = vadd.xlane.f32.xlu0 %v1161_v9 }
 0x176   : > { %1129 = vadd.xlane.f32.xlu1 %v1128_v54 }
 0x179   : > { %1165 = vadd.xlane.f32.xlu0 %v1164_v40  ;;  %v3969_v40 = vsub.s32 %v1321_v14, %v3216_v13 }
 0x17a   : > { %1132 = vadd.xlane.f32.xlu1 %v1131_v63 }
 0x17d   : > { %1168 = vadd.xlane.f32.xlu0 %v1167_v36 }
 0x17e   : > { %1135 = vadd.xlane.f32.xlu1 %v1134_v48 }
 0x181   : > { %1171 = vadd.xlane.f32.xlu0 %v1170_v34 }
 0x182   : > { %1138 = vadd.xlane.f32.xlu1 %v1137_v30 }
 0x185   : > { %1174 = vadd.xlane.f32.xlu0 %v1173_v20 }
 0x186   : > { %1147 = vadd.xlane.f32.xlu1 %v1146_v6 }
 0x189   : > { %1177 = vadd.xlane.f32.xlu0 %v1176_v3 }
 0x18a   : > { %1048 = vadd.xlane.f32.xlu1 %v1047_v29  ;;  %v3978_v29 = vsub.s32 %v1328_v41, %v3216_v13 }
 0x18d   : > { %1180 = vadd.xlane.f32.xlu0 %v1179_v61  ;;  %v1335_v61 = vadd.s32 4294967208, %v3914_v38 }
 0x18e   : > { %1141 = vadd.xlane.f32.xlu1 %v1140_v52 }
 0x191   : > { %1183 = vadd.xlane.f32.xlu0 %v1182_v0 }
 0x192   : > { %1144 = vadd.xlane.f32.xlu1 %v1143_v51 }
 0x195   : > { %1186 = vadd.xlane.f32.xlu0 %v1185_v60 }
 0x196   : > { %1192 = vadd.xlane.f32.xlu1 %v1191_v50  ;;  %v3984_v50 = vsub.s32 %v1335_v61, %v3216_v13 }
 0x199   : > { %1189 = vadd.xlane.f32.xlu0 %v1188_v2  ;;  %v1342_v2 = vadd.s32 4294967200, %v3914_v38 }
 0x19b   : > { %v3990_v25 = vsub.s32 %v1342_v2, %v3216_v13 }
 0x1a7   : > { %v1016_v42 = vpop.xlane.xlu1 %1015  ;;  %v1004_v26 = vpop.xlane.xlu0 %1003 }
 0x1a8   : > { %v1264_v46 = vrot.slane %v1004_v26, %v3919_v49  ;;  %v1290_v57 = vrot.slane %v1016_v42, %v3942_v28 }
 0x1ab   : > { %v1019_v39 = vpop.xlane.xlu1 %1018  ;;  %v1007_v55 = vpop.xlane.xlu0 %1006 }
 0x1ac   : > { %v1269_v15 = vrot.slane %v1007_v55, %v3922_v24  ;;  %v1297_v35 = vrot.slane %v1019_v39, %v3945_v1  ;;  %v1349_v39 = vadd.s32 4294967192, %v3914_v38 }
 0x1ae   : > { %v1271_v58 = vsel %vm1270_vm2, %v1269_v15, %v1264_v46  ;;  %v3996_v56 = vsub.s32 %v1349_v39, %v3216_v13 }
 0x1af   : > { %v1022_v5 = vpop.xlane.xlu1 %1021  ;;  %v1010_v33 = vpop.xlane.xlu0 %1009 }
 0x1b0   : > { %v1276_v32 = vrot.slane %v1010_v33, %v3928_v17  ;;  %v1304_v43 = vrot.slane %v1022_v5, %v3949_v59 }
 0x1b2   : > { %v1278_v23 = vsel %vm1277_vm3, %v1276_v32, %v1271_v58 }
 0x1b3   : > { %v1025_v45 = vpop.xlane.xlu1 %1024  ;;  %v1013_v62 = vpop.xlane.xlu0 %1012 }
 0x1b4   : > { %v1283_v10 = vrot.slane %v1013_v62, %v3939_v31  ;;  %v1311_v63 = vrot.slane %v1025_v45, %v3956_v11 }
 0x1b6   : > { %v1285_v12 = vsel %vm1284_vm4, %v1283_v10, %v1278_v23 }
 0x1b7   : > { %v1028_v19 = vpop.xlane.xlu1 %1027  ;;  %v1292_v4 = vsel %vm1291_vm5, %v1290_v57, %v1285_v12  ;;  %v3966_v54 = vpop.xlane.xlu0 %1099 }
 0x1b8   : > { %v1318_v9 = vrot.slane %v1028_v19, %v3952_v27  ;;  %v1299_v36 = vsel %vm1298_vm6, %v1297_v35, %v1292_v4 }
 0x1b9   : > { %v1306_v48 = vsel %vm1305_vm7, %v1304_v43, %v1299_v36  ;;  %v1452_v43 = vrot.slane %v3966_v54, %v3919_v49 }
 0x1ba   : > { %v1313_v34 = vsel %vm1312_vm8, %v1311_v63, %v1306_v48 }
 0x1bb   : > { %v1031_v30 = vpop.xlane.xlu1 %1030  ;;  %v1320_v20 = vsel %vm1319_vm9, %v1318_v9, %v1313_v34  ;;  %v1106_v3 = vpop.xlane.xlu0 %1105 }
 0x1bc   : > { %v1325_v6 = vrot.slane %v1031_v30, %v3969_v40  ;;  %v1461_v36 = vrot.slane %v1106_v3, %v3928_v17 }
 0x1be   : > { %v1327_v52 = vsel %vm1326_vm10, %v1325_v6, %v1320_v20 }
 0x1bf   : > { %v1034_v0 = vpop.xlane.xlu1 %1033  ;;  %v1064_v60 = vpop.xlane.xlu0 %1063 }
 0x1c0   : > { %v1332_v51 = vrot.slane %v1034_v0, %v3978_v29  ;;  %v1392_v0 = vrot.slane %v1064_v60, %v3942_v28 }
 0x1c2   : > { %v1334_v37 = vsel %vm1333_vm11, %v1332_v51, %v1327_v52 }
 0x1c3   : > { %v1037_v7 = vpop.xlane.xlu1 %1036  ;;  %v1067_v26 = vpop.xlane.xlu0 %1066 }
 0x1c4   : > { %v1339_v42 = vrot.slane %v1037_v7, %v3984_v50  ;;  %v1397_v3 = vrot.slane %v1067_v26, %v3945_v1 }
 0x1c6   : > { %v1341_v55 = vsel %vm1340_vm12, %v1339_v42, %v1334_v37 }
 0x1c7   : > { %v1040_v46 = vpop.xlane.xlu1 %1039  ;;  %v1070_v16 = vpop.xlane.xlu0 %1069 }
 0x1c8   : > { %v1346_v15 = vrot.slane %v1040_v46, %v3990_v25  ;;  %v1402_v37 = vrot.slane %v1070_v16, %v3949_v59 }
 0x1ca   : > { %v1348_v58 = vsel %vm1347_vm13, %v1346_v15, %v1341_v55 }
 0x1cb   : > { %v1043_v5 = vpop.xlane.xlu1 %1042  ;;  %v1073_v33 = vpop.xlane.xlu0 %1072 }
 0x1cc   : > { %v1353_v21 = vrot.slane %v1043_v5, %v3996_v56  ;;  %v1407_v39 = vrot.slane %v1073_v33, %v3956_v11 }
 0x1ce   : > { %v1355_v32 = vsel %vm1354_vm14, %v1353_v21, %v1348_v58 }
 0x1cf   : > { %v1046_v22 = vpop.xlane.xlu1 %1045  ;;  %v1076_v45 = vpop.xlane.xlu0 %1075 }
 0x1d0   : > { %v1360_v23 = vrot.slane %v1046_v22, %v4002_v44  ;;  %v1412_v15 = vrot.slane %v1076_v45, %v3952_v27 }
 0x1d2   : > { %v4007_v62 = vsel %vm1361_vm15, %v1360_v23, %v1355_v32 }
 0x1d3   : > { %v1052_v14 = vpop.xlane.xlu1 %1051  ;;  %v1079_v10 = vpop.xlane.xlu0 %1078 }
 0x1d4   : > { %v1373_v34 = vrot.slane %v1052_v14, %v3919_v49  ;;  %v1417_v53 = vrot.slane %v1079_v10, %v3969_v40 }
 0x1d7   : > { %v1055_v57 = vpop.xlane.xlu1 %1054 }
 0x1d8   : > { %v1377_v4 = vrot.slane %v1055_v57, %v3922_v24 }
 0x1d9   : > { %v1082_v35 = vpop.xlane.xlu0 %1081 }
 0x1da   : > { %v1378_v61 = vsel %vm1270_vm2, %v1377_v4, %v1373_v34  ;;  %v1422_v58 = vrot.slane %v1082_v35, %v3978_v29 }
 0x1db   : > { %v1058_v12 = vpop.xlane.xlu1 %1057 }
 0x1dc   : > { %v1382_v48 = vrot.slane %v1058_v12, %v3928_v17 }
 0x1dd   : > { %v1085_v19 = vpop.xlane.xlu0 %1084 }
 0x1de   : > { %v1383_v51 = vsel %vm1277_vm3, %v1382_v48, %v1378_v61  ;;  %v1427_v21 = vrot.slane %v1085_v19, %v3984_v50 }
 0x1df   : > { %v1103_v41 = vpop.xlane.xlu1 %1102 }
 0x1e0   : > { %v1456_v63 = vrot.slane %v1103_v41, %v3922_v24 }
 0x1e2   : > { %v1088_v9 = vpop.xlane.xlu0 %1087  ;;  %v1457_v30 = vsel %vm1270_vm2, %v1456_v63, %v1452_v43 }
 0x1e3   : > { %v1061_v20 = vpop.xlane.xlu1 %1060  ;;  %v1462_v6 = vsel %vm1277_vm3, %v1461_v36, %v1457_v30  ;;  %v1432_v22 = vrot.slane %v1088_v9, %v3990_v25 }
 0x1e4   : > { %v1387_v54 = vrot.slane %v1061_v20, %v3939_v31 }
 0x1e6   : > { %v1091_v52 = vpop.xlane.xlu0 %1090  ;;  %v1388_v2 = vsel %vm1284_vm4, %v1387_v54, %v1383_v51  ;;  %v1363_v54 = vadd.s32 4294967176, %v3914_v38 }
 0x1e7   : > { %v1393_v7 = vsel %vm1291_vm5, %v1392_v0, %v1388_v2  ;;  %v1109_v42 = vpop.xlane.xlu1 %1108  ;;  %v1437_v0 = vrot.slane %v1091_v52, %v3996_v56 }
 0x1e8   : > { %v1398_v55 = vsel %vm1298_vm6, %v1397_v3, %v1393_v7  ;;  %v1466_v51 = vrot.slane %v1109_v42, %v3939_v31 }
 0x1e9   : > { %v1403_v60 = vsel %vm1305_vm7, %v1402_v37, %v1398_v55 }
 0x1ea   : > { %v1094_v46 = vpop.xlane.xlu0 %1093  ;;  %v1408_v26 = vsel %vm1312_vm8, %v1407_v39, %v1403_v60  ;;  %v4054_v39 = vsub.s32 %v1363_v54, %v3216_v13  ;;  %v1467_v52 = vsel %vm1284_vm4, %v1466_v51, %v1462_v6 }
 0x1eb   : > { %v1413_v16 = vsel %vm1319_vm9, %v1412_v15, %v1408_v26  ;;  %v1112_v5 = vpop.xlane.xlu1 %1111  ;;  %v1442_v15 = vrot.slane %v1094_v46, %v4002_v44 }
 0x1ec   : > { %v1418_v33 = vsel %vm1326_vm10, %v1417_v53, %v1413_v16  ;;  %v1471_v2 = vrot.slane %v1112_v5, %v3942_v28 }
 0x1ed   : > { %v1423_v23 = vsel %vm1333_vm11, %v1422_v58, %v1418_v33 }
 0x1ee   : > { %v1097_v32 = vpop.xlane.xlu0 %1096  ;;  %v1428_v45 = vsel %vm1340_vm12, %v1427_v21, %v1423_v23  ;;  %v1472_v58 = vsel %vm1291_vm5, %v1471_v2, %v1467_v52 }
 0x1ef   : > { %v1433_v14 = vsel %vm1347_vm13, %v1432_v22, %v1428_v45  ;;  %v1115_v10 = vpop.xlane.xlu1 %1114  ;;  %v1447_v33 = vrot.slane %v1097_v32, %v4054_v39 }
 0x1f0   : > { %v1438_v7 = vsel %vm1354_vm14, %v1437_v0, %v1433_v14  ;;  %v1476_v55 = vrot.slane %v1115_v10, %v3945_v1 }
 0x1f1   : > { %v1443_v26 = vsel %vm1361_vm15, %v1442_v15, %v1438_v7 }
 0x1f2   : > { %v1151_v57 = vpop.xlane.xlu0 %1150  ;;  %v1477_v46 = vsel %vm1298_vm6, %v1476_v55, %v1472_v58 }
 0x1f3   : > { %v1118_v12 = vpop.xlane.xlu1 %1117  ;;  %v1535_v16 = vrot.slane %v1151_v57, %v3922_v24  ;;  %v1448_v24 = vsel %vm1368_vm0, %v1447_v33, %v1443_v26 }
 0x1f4   : > { %v1481_v60 = vrot.slane %v1118_v12, %v3949_v59 }
 0x1f6   : > { %v1154_v35 = vpop.xlane.xlu0 %1153  ;;  %v1482_v23 = vsel %vm1305_vm7, %v1481_v60, %v1477_v46 }
 0x1f7   : > { %v1121_v41 = vpop.xlane.xlu1 %1120  ;;  %v1540_v22 = vrot.slane %v1154_v35, %v3928_v17 }
 0x1f8   : > { %v1486_v42 = vrot.slane %v1121_v41, %v3956_v11 }
 0x1fa   : > { %v1157_v43 = vpop.xlane.xlu0 %1156  ;;  %v1487_v10 = vsel %vm1312_vm8, %v1486_v42, %v1482_v23 }
 0x1fb   : > { %v1124_v4 = vpop.xlane.xlu1 %1123  ;;  %v1545_v45 = vrot.slane %v1157_v43, %v3939_v31 }
 0x1fc   : > { %v1491_v6 = vrot.slane %v1124_v4, %v3952_v27 }
 0x1fe   : > { %v1160_v63 = vpop.xlane.xlu0 %1159  ;;  %v1492_v43 = vsel %vm1319_vm9, %v1491_v6, %v1487_v10  ;;  %v3051_v10 = vmov 0.0  }
 0x1ff   : > { %v1127_v19 = vpop.xlane.xlu1 %1126  ;;  %2693 = vmatprep.subr.bf16.mxu1 %v3051_v10  ;;  %2701 = vmatprep.subr.bf16.mxu0 %v3051_v10 }
 0x200   : > { %v1496_v17 = vrot.slane %v1127_v19, %v3969_v40 }
 0x202   : > { %v1163_v36 = vpop.xlane.xlu0 %1162  ;;  %v1497_v2 = vsel %vm1326_vm10, %v1496_v17, %v1492_v43  ;;  %v2874_v17 = vld [vmem:[%s4407_s1 + $0x48] sm:$0xff]  }
 0x203   : > { %v4040_v48 = vpop.xlane.xlu1 %1129  ;;  %v1555_v12 = vrot.slane %v1163_v36, %v3945_v1 }
 0x204   : > { %v1501_v4 = vrot.slane %v4040_v48, %v3978_v29 }
 0x206   : > { %v1166_v34 = vpop.xlane.xlu0 %1165  ;;  %v1502_v7 = vsel %vm1333_vm11, %v1501_v4, %v1497_v2 }
 0x207   : > { %v4042_v9 = vpop.xlane.xlu1 %1132  ;;  %v1560_v54 = vrot.slane %v1166_v34, %v3949_v59 }
 0x20a   : > { %v1169_v30 = vpop.xlane.xlu0 %1168 }
 0x20b   : > { %v4044_v20 = vpop.xlane.xlu1 %1135  ;;  %v1565_v19 = vrot.slane %v1169_v30, %v3956_v11 }
 0x20c   : > { %v1511_v0 = vrot.slane %v4044_v20, %v3990_v25 }
 0x20e   : > { %v1172_v61 = vpop.xlane.xlu0 %1171 }
 0x20f   : > { %v4049_v3 = vpop.xlane.xlu1 %1138  ;;  %v1570_v51 = vrot.slane %v1172_v61, %v3952_v27 }
 0x210   : > { %v1516_v11 = vrot.slane %v4049_v3, %v3996_v56 }
 0x212   : > { %v1175_v37 = vpop.xlane.xlu0 %1174 }
 0x213   : > { %v1148_v53 = vpop.xlane.xlu1 %1147 }
 0x214   : > { %v1531_v21 = vrot.slane %v1148_v53, %v3919_v49  ;;  %v1550_v49 = vrot.slane %v1160_v63, %v3942_v28  ;;  %v1506_v63 = vrot.slane %v4042_v9, %v3984_v50  ;;  %v1575_v9 = vrot.slane %v1175_v37, %v3969_v40 }
 0x216   : > { %v1178_v5 = vpop.xlane.xlu0 %1177  ;;  %v1536_v14 = vsel %vm1270_vm2, %v1535_v16, %v1531_v21  ;;  %v1507_v55 = vsel %vm1340_vm12, %v1506_v63, %v1502_v7  ;;  %vm1609_vm2 = vcmask 1042434   ;;  %v2880_v63 = vld [vmem:[%s4407_s1 + $0x60] sm:$0xff]  }
 0x217   : > { %v1541_v32 = vsel %vm1277_vm3, %v1540_v22, %v1536_v14  ;;  %v1049_v57 = vpop.xlane.xlu1 %1048  ;;  %v1580_v20 = vrot.slane %v1178_v5, %v3978_v29  ;;  %v1512_v3 = vsel %vm1347_vm13, %v1511_v0, %v1507_v55  ;;  %vm1611_vm3 = vcmask 1043459   ;;  %v2884_v0 = vld [vmem:[%s4407_s1 + $0x70] sm:$0xff]   ;;  %v2887_v7 = vld [vmem:[%s4407_s1 + $0x80] sm:$0xff]  }
 0x218   : > { %v1546_v35 = vsel %vm1284_vm4, %v1545_v45, %v1541_v32  ;;  %v1367_v31 = vrot.slane %v1049_v57, %v4054_v39  ;;  %v1517_v52 = vsel %vm1354_vm14, %v1516_v11, %v1512_v3  ;;  %vm1196_vm4 = vcmp.lt.s32.totalorder %v3914_v38, 16  ;;  %v2870_v38 = vld [vmem:[%s4412_s6 + $0x20] ss:$12 sps:$4 sm:$0xff]   ;;  %v2875_v57 = vld [vmem:[%s4407_s1 + $0x10] sm:$0xff]  }
 0x219   : > { %v1551_v28 = vsel %vm1291_vm5, %v1550_v49, %v1546_v35  ;;  %vm1615_vm5 = vcmask 1043456   ;;  %v2873_v49 = vld [vmem:[%s4407_s1 + $0x8] sm:$0xff]   ;;  %v2872_v32 = vld [vmem:[%s4407_s1 + $0x40] sm:$0xff]   ;;  %v2892_v3 = vld [vmem:[%s4407_s1 + $0xd0] sm:$0xff]  }
 0x21a   : > { %v1181_v41 = vpop.xlane.xlu0 %1180  ;;  %v1556_v1 = vsel %vm1298_vm6, %v1555_v12, %v1551_v28  ;;  %v1369_v36 = vsel %vm1368_vm0, %v1367_v31, %v4007_v62  ;;  %vm3052_vm6 = vmmov 0   ;;  %v2877_v12 = vld [vmem:[%s4407_s1 + $0x18] sm:$0xff]   ;;  %v2879_v28 = vld [vmem:[%s4407_s1 + $0x20] sm:$0xff]  }
 0x21b   : > { %v1561_v48 = vsel %vm1305_vm7, %v1560_v54, %v1556_v1  ;;  %v1142_v59 = vpop.xlane.xlu1 %1141  ;;  %v1608_v34 = vsel %vm1607_vm1, %v1448_v24, %v1369_v36  ;;  %v1585_v60 = vrot.slane %v1181_v41, %v3984_v50  ;;  %2697 = vmatprep.mubr.msk.bf16.mxu1 %vm3052_vm6, %v3051_v10  ;;  %2717 = vmatprep.mubr.msk.bf16.mxu0 %vm3052_vm6, %v3051_v10  ;;  %vm4467_vm7 = vcmask 261120   ;;  %v2878_v54 = vld [vmem:[%s4407_s1 + $0x58] sm:$0xff]   ;;  %v2882_v1 = vld [vmem:[%s4407_s1 + $0x68] sm:$0xff]   ;;  %v2883_v36 = vld [vmem:[%s4407_s1 + $0x30] sm:$0xff]  }
 0x21c   : > { %v1566_v30 = vsel %vm1312_vm8, %v1565_v19, %v1561_v48  ;;  %v1521_v61 = vrot.slane %v1142_v59, %v4002_v44  ;;  %v2881_v19 = vld [vmem:[%s4407_s1 + $0x28] sm:$0xff]   ;;  %v2886_v48 = vld [vmem:[%s4407_s1 + $0x78] sm:$0xff]  }
 0x21d   : > { %v1571_v27 = vsel %vm1319_vm9, %v1570_v51, %v1566_v30  ;;  %v2885_v51 = vld [vmem:[%s4407_s1 + $0x38] sm:$0xff]  }
 0x21e   : > { %v1184_v62 = vpop.xlane.xlu0 %1183  ;;  %v1576_v15 = vsel %vm1326_vm10, %v1575_v9, %v1571_v27  ;;  %v1522_v58 = vsel %vm1361_vm15, %v1521_v61, %v1517_v52  ;;  %v2888_v61 = vld [vmem:[%s4407_s1 + $0xc0] sm:$0xff]  }
 0x21f   : > { %v1581_v40 = vsel %vm1333_vm11, %v1580_v20, %v1576_v15  ;;  %v1145_v37 = vpop.xlane.xlu1 %1144  ;;  %v1590_v26 = vrot.slane %v1184_v62, %v3990_v25  ;;  %v2889_v15 = vld [vmem:[%s4407_s1 + $0x88] sm:$0xff]   ;;  %v2895_v52 = vld [vmem:[%s4407_s1 + $0xa0] sm:$0xff]  }
 0x220   : > { %v1586_v42 = vsel %vm1340_vm12, %v1585_v60, %v1581_v40  ;;  %v1526_v53 = vrot.slane %v1145_v37, %v4054_v39  ;;  %v2891_v60 = vld [vmem:[%s4407_s1 + $0x90] sm:$0xff]   ;;  %v2893_v40 = vld [vmem:[%s4407_s1 + $0x98] sm:$0xff]  }
 0x221   : > { %v1591_v5 = vsel %vm1347_vm13, %v1590_v26, %v1586_v42  ;;  %v2894_v37 = vld [vmem:[%s4407_s1 + $0xd8] sm:$0xff]   ;;  %v2896_v42 = vld [vmem:[%s4407_s1 + $0xe0] sm:$0xff]   ;;  %v2899_v26 = vld [vmem:[%s4407_s1 + $0xb0] sm:$0xff]  }
 0x222   : > { %v1187_v29 = vpop.xlane.xlu0 %1186  ;;  %v1527_v50 = vsel %vm1368_vm0, %v1526_v53, %v1522_v58  ;;  %v2898_v53 = vld [vmem:[%s4407_s1 + $0xe8] sm:$0xff]   ;;  %v2900_v58 = vld [vmem:[%s4407_s1 + $0xf0] sm:$0xff]  }
 0x223   : > { %v1595_v16 = vrot.slane %v1187_v29, %v3996_v56  ;;  %v1193_v21 = vpop.xlane.xlu1 %1192  ;;  %v1610_v33 = vsel %vm1609_vm2, %v1527_v50, %v1608_v34  ;;  %v2897_v29 = vld [vmem:[%s4407_s1 + $0xa8] sm:$0xff]  }
 0x224   : > { %v1605_v22 = vrot.slane %v1193_v21, %v4054_v39  ;;  %v2871_v39 = vld [vmem:[%s4407_s1] sm:$0xff]  }
 0x225   : > { %v1596_v23 = vsel %vm1354_vm14, %v1595_v16, %v1591_v5  ;;  %2702 = vmatpush3.bf16.msra.mxu0 %v2871_v39  ;;  %v2901_v16 = vld [vmem:[%s4407_s1 + $0xb8] sm:$0xff]  }
 0x226   : > { %v1190_v46 = vpop.xlane.xlu0 %1189  ;;  %2703 = vmatprep.subr.bf16.mxu0 %v3051_v10  ;;  %v2902_v5 = vld [vmem:[%s4407_s1 + $0xf8] sm:$0xff]  }
 0x227   : > { %v1600_v6 = vrot.slane %v1190_v46, %v4002_v44  ;;  %v2869_v44 = vld [vmem:[%s4412_s6 + $0x8] ss:$12 sps:$4 sm:$0xff]  }
 0x228   : > { %2694 = vmatpush3.bf16.msra.mxu1 %v2869_v44 }
 0x229   : > { %v1601_v25 = vsel %vm1361_vm15, %v1600_v6, %v1596_v23  ;;  %2695 = vmatprep.subr.bf16.mxu1 %v3051_v10  ;;  %2704 = vmatpush3.bf16.msra.mxu0 %v2873_v49  ;;  %v2904_v6 = vld [vmem:[%s4415_s9 + $0x8] sm:$0xff]   ;;  %v495_v23 = vld [vmem:[#allocation3] sm:$0xf] }
 0x22a   : > { %v1606_v56 = vsel %vm1368_vm0, %v1605_v22, %v1601_v25  ;;  %2705 = vmatprep.subr.bf16.mxu0 %v3051_v10  ;;  %v2903_v22 = vld [vmem:[%s4415_s9] sm:$0xff]  }
 0x22b   : > { %v1612_v45 = vsel %vm1611_vm3, %v1606_v56, %v1610_v33  ;;  %v2447_v25 = vld [vmem:[%s4413_s7] ss:$0 sm:$0xff] }
 0x22c   : > { %v1614_v14 = vsel %vm1196_vm4, %v1612_v45, -1e+30  ;;  %2696 = vmatpush3.bf16.msra.mxu1 %v2870_v38 }
 0x22d   : > { %v1616_v24 = vsel %vm1615_vm5, %v1614_v14, -inf  ;;  %2721 = vmatprep.subr.bf16.mxu1 %v3051_v10  ;;  %2706 = vmatpush3.bf16.msra.mxu0 %v2875_v57 }
 0x22e   : > { %1617 = vmax.xlane.f32.xlu0 %v1616_v24  ;;  %2707 = vmatprep.subr.bf16.mxu0 %v3051_v10 }
 0x22f   : > { %2698 = vmatmul.mubr.msk.bf16.vlgmr.msra.gmra.mrb[0].mxu1 %vm4467_vm7, %v3211_v8  ;;  %v2876_v8 = vld [vmem:[%s4407_s1 + $0x50] sm:$0xff]  }
 0x230   : > { %2722 = vmatpush3.bf16.msra.mxu1 %v2872_v32  ;;  %2737 = vmatprep.mubr.msk.bf16.mxu1 %vm3052_vm6, %v3051_v10 }
 0x231   : > { %2723 = vmatprep.subr.bf16.mxu1 %v3051_v10  ;;  %2708 = vmatpush3.bf16.msra.mxu0 %v2877_v12 }
 0x232   : > { %2709 = vmatprep.subr.bf16.mxu0 %v3051_v10 }
 0x234   : > { %2724 = vmatpush3.bf16.msra.mxu1 %v2874_v17 }
 0x235   : > { %2725 = vmatprep.subr.bf16.mxu1 %v3051_v10  ;;  %2710 = vmatpush3.bf16.msra.mxu0 %v2879_v28 }
 0x236   : > { %2711 = vmatprep.subr.bf16.mxu0 %v3051_v10 }
 0x238   : > { %2726 = vmatpush3.bf16.msra.mxu1 %v2876_v8 }
 0x239   : > { %2727 = vmatprep.subr.bf16.mxu1 %v3051_v10  ;;  %2712 = vmatpush3.bf16.msra.mxu0 %v2881_v19 }
 0x23a   : > { %2713 = vmatprep.subr.bf16.mxu0 %v3051_v10 }
 0x23c   : > { %2728 = vmatpush3.bf16.msra.mxu1 %v2878_v54 }
 0x23d   : > { %2729 = vmatprep.subr.bf16.mxu1 %v3051_v10  ;;  %2714 = vmatpush3.bf16.msra.mxu0 %v2883_v36 }
 0x23e   : > { %2715 = vmatprep.subr.bf16.mxu0 %v3051_v10 }
 0x240   : > { %2730 = vmatpush3.bf16.msra.mxu1 %v2880_v63 }
 0x241   : > { %2731 = vmatprep.subr.bf16.mxu1 %v3051_v10  ;;  %2716 = vmatpush3.bf16.msra.mxu0 %v2885_v51 }
 0x242   : > { %2741 = vmatprep.subr.bf16.mxu0 %v3051_v10 }
 0x244   : > { %2732 = vmatpush3.bf16.msra.mxu1 %v2882_v1 }
 0x245   : > { %2733 = vmatprep.subr.bf16.mxu1 %v3051_v10 }
 0x248   : > { %2734 = vmatpush3.bf16.msra.mxu1 %v2884_v0 }
 0x249   : > { %2735 = vmatprep.subr.bf16.mxu1 %v3051_v10 }
 0x24c   : > { %2736 = vmatpush3.bf16.msra.mxu1 %v2886_v48 }
 0x24d   : > { %2761 = vmatprep.subr.bf16.mxu1 %v3051_v10 }
 0x2bb   : > { %v1618_v35 = vpop.xlane.xlu0 %1617 }
 0x2bc   : > { %v1619_v41 = vsub.f32 %v1614_v14, %v1618_v35  ;;  %v629_v14 = vadd.f32 %v2447_v25, %v3310_v47 }
 0x2be   : > { %v1620_v31 = vmul.f32 1.442695, %v1619_v41  ;;  %v2481_v17 = vmul.f32 -1.442695, %v629_v14 }
 0x2c0   : > { %2905 = vpow2.f32 %v1620_v31 }
 0x2ca   : > { %v2906_v43 = vpop.eup %2905 }
 0x2cb   : > { %v1622_v4 = vsel %vm1615_vm5, %v2906_v43, 0.0 }
 0x2cc   : > { %1623 = vadd.xlane.f32.xlu1 %v1622_v4 }
 0x2dd   : > { %2165 = vrot.lane.b32.xlu1 %v495_v23, %s4424_s17 }
 0x359   : > { %v1624_v59 = vpop.xlane.xlu1 %1623 }
 0x35a   : > { %2907 = vrcp.f32 %v1624_v59  ;;  %v2094_v59 = vld [vmem:[%s3186_s27] sm:$0xf]  ;;  %s4423_s27 = smov 96  }
 0x35b   : > { %2909 = vpow2.f32 %v2481_v17 }
 0x364   : > { %v2908_v34 = vpop.eup %2907 }
 0x365   : > { %v1626_v2 = vmul.f32 %v2908_v34, %v2906_v43  ;;  %v2910_v12 = vpop.eup %2909 }
 0x366   : > { %v2079_v8 = vadd.f32 1.0, %v2910_v12 }
 0x367   : > { %v1634_v11 = vrot.slane %v1626_v2, %v3239_v18  ;;  %v2226_v9 = vpack.c.bf16 %v1626_v2, %v1626_v2 }
 0x368   : > { %2911 = vrcp.f32 %v2079_v8 }
 0x369   : > { %v1642_v30 = vrot.slane %v1634_v11, %v3239_v18  ;;  %v1635_v62 = vcombine.high %v1634_v11, %v1634_v11  ;;  %2227 = vst [vmem:[%s3190_s30] sm:$0x3] %v2226_v9  ;;  %s3057_s30 = smov [#allocation8]  }
 0x36b   : > { %v1656_v20 = vpack.c.bf16 %v1642_v30, %v1642_v30  ;;  %v1649_v27 = vrot.slane %v1635_v62, %v3239_v18  ;;  %v2890_v18 = vld [vmem:[%s4407_s1 + $0xc8] sm:$0xff]   ;;  %v1650_v50 = vcombine.high %v1642_v30, %v1642_v30 }
 0x36d   : > { %2718 = vmatmul.mubr.bf16.vlgmr.msra.gmra.mrb[4].mxu0 %v1656_v20  ;;  %v1657_v55 = vpack.c.bf16 %v1649_v27, %v1649_v27  ;;  %v1651_v21 = vcombine.high %v1649_v27, %v1649_v27  ;;  %v1658_v33 = vpack.c.bf16 %v1650_v50, %v1650_v50 }
 0x36e   : > { %2742 = vmatpush3.bf16.msra.mxu0 %v2887_v7  ;;  %2757 = vmatprep.mubr.msk.bf16.mxu0 %vm3052_vm6, %v3051_v10 }
 0x36f   : > { %2738 = vmatmul.mubr.bf16.vlgmr.msra.gmra.mrb[4].mxu1 %v1657_v55  ;;  %2743 = vmatprep.subr.bf16.mxu0 %v3051_v10  ;;  %v1659_v46 = vpack.c.bf16 %v1651_v21, %v1651_v21 }
 0x370   : > { %2762 = vmatpush3.bf16.msra.mxu1 %v2888_v61  ;;  %2777 = vmatprep.mubr.msk.bf16.mxu1 %vm3052_vm6, %v3051_v10 }
 0x371   : > { %2763 = vmatprep.subr.bf16.mxu1 %v3051_v10 }
 0x372   : > { %2744 = vmatpush3.bf16.msra.mxu0 %v2889_v15  ;;  %v2912_v1 = vpop.eup %2911 }
 0x373   : > { %2745 = vmatprep.subr.bf16.mxu0 %v3051_v10 }
 0x374   : > { %2764 = vmatpush3.bf16.msra.mxu1 %v2890_v18  ;;  %v2921_v18 = vld [vmem:[#allocation2] sm:$0xf] }
 0x375   : > { %2765 = vmatprep.subr.bf16.mxu1 %v3051_v10 }
 0x376   : > { %2746 = vmatpush3.bf16.msra.mxu0 %v2891_v60  ;;  %v2166_v60 = vpop.permute.xlu1 %2165 }
 0x377   : > { %2747 = vmatprep.subr.bf16.mxu0 %v3051_v10 }
 0x378   : > { %2766 = vmatpush3.bf16.msra.mxu1 %v2892_v3 }
 0x379   : > { %2767 = vmatprep.subr.bf16.mxu1 %v3051_v10 }
 0x37a   : > { %2748 = vmatpush3.bf16.msra.mxu0 %v2893_v40 }
 0x37b   : > { %2749 = vmatprep.subr.bf16.mxu0 %v3051_v10 }
 0x37c   : > { %2768 = vmatpush3.bf16.msra.mxu1 %v2894_v37 }
 0x37d   : > { %2769 = vmatprep.subr.bf16.mxu1 %v3051_v10 }
 0x37e   : > { %2750 = vmatpush3.bf16.msra.mxu0 %v2895_v52 }
 0x37f   : > { %2751 = vmatprep.subr.bf16.mxu0 %v3051_v10 }
 0x380   : > { %2770 = vmatpush3.bf16.msra.mxu1 %v2896_v42  ;;  %v3056_v42 = vmov 1983009808  }
 0x381   : > { %2771 = vmatprep.subr.bf16.mxu1 %v3051_v10 }
 0x382   : > { %2752 = vmatpush3.bf16.msra.mxu0 %v2897_v29  ;;  %v2215_v29 = vunpack.c.l.s4 %v3056_v42 }
 0x383   : > { %2753 = vmatprep.subr.bf16.mxu0 %v3051_v10 }
 0x384   : > { %2772 = vmatpush3.bf16.msra.mxu1 %v2898_v53  ;;  %v2216_v53 = vunpack.c.0.s8 %v2215_v29 }
 0x385   : > { %2773 = vmatprep.subr.bf16.mxu1 %v3051_v10 }
 0x386   : > { %2754 = vmatpush3.bf16.msra.mxu0 %v2899_v26  ;;  %v2191_v26 = vstv %s2190_s25  ;;  %s2938_s25 = sshll.u32 %s3057_s30, 4  ;;  %s2939_s25 = int_to_ptr.vmem [resolvable:$false] %s2938_s25 }
 0x387   : > { %2755 = vmatprep.subr.bf16.mxu0 %v3051_v10  ;;  %vm4314_vm8 = vcmp.lt.s32.totalorder %v3216_v13, %v2191_v26  ;;  %s2940_s13 = scalar_lea.vmem %s2939_s25, 64  ;;  %p2941_p7 = scmp.lt.s32.totalorder %s4318_s20, %s2939_s25 }
 0x388   : > { %2774 = vmatpush3.bf16.msra.mxu1 %v2900_v58 }
 0x389   : > { %2775 = vmatprep.subr.bf16.mxu1 %v3051_v10 }
 0x38a   : > { %2756 = vmatpush3.bf16.msra.mxu0 %v2901_v16 }
 0x38c   : > { %2776 = vmatpush3.bf16.msra.mxu1 %v2902_v5  ;;  %v2219_v5 = vsub.s32 %v2216_v53, %v3216_v13 }
 0x38d   : > { %2758 = vmatmul.mubr.bf16.vlgmr.msra.gmra.mrb[8].mxu0 %v1658_v33  ;;  %2781 = vmatprep.subr.bf16.mxu1 %v3051_v10 }
 0x38f   : > { %2778 = vmatmul.mubr.bf16.vlgmr.msra.gmra.mrb[8].mxu1 %v1659_v46 }
 0x390   : > { %2785 = vmatprep.mubr.msk.bf16.mxu1 %vm3052_vm6, %v3051_v10  ;;  %2782 = vmatpush3.bf16.msra.mxu1 %v2903_v22 }
 0x391   : > { %2783 = vmatprep.subr.bf16.mxu1 %v3051_v10 }
 0x394   : > { %2784 = vmatpush3.bf16.msra.mxu1 %v2904_v6 }
 0x440   : > { %v1806_v56 = vpop.f32.mrb[4].mxu0 }
 0x441   : > { %v2719_v45 = vpop.f32.mrb[5].mxu0 }
 0x442   : > { %v1809_v24 = vpop.f32.mrb[6].mxu0  ;;  %v1894_v44 = vpop.f32.mrb[4].mxu1 }
 0x443   : > { %v2086_v39 = vrot.slane %v1894_v44, 7  ;;  %v2720_v38 = vpop.f32.mrb[7].mxu0  ;;  %v2739_v49 = vpop.f32.mrb[5].mxu1 }
 0x444   : > { %v1897_v32 = vpop.f32.mrb[6].mxu1 }
 0x445   : > { %v2087_v10 = vsel %vm1607_vm1, %v2086_v39, %v1806_v56  ;;  %v2740_v57 = vpop.f32.mrb[7].mxu1  ;;  %vm4468_vm1 = vmmov %vm4467_vm7 }
 0x460   : > { %v1982_v35 = vpop.f32.mrb[8].mxu0 }
 0x461   : > { %v2088_v41 = vrot.slane %v1982_v35, 6  ;;  %v2759_v31 = vpop.f32.mrb[9].mxu0 }
 0x462   : > { %v1985_v43 = vpop.f32.mrb[10].mxu0  ;;  %v2070_v47 = vpop.f32.mrb[8].mxu1 }
 0x463   : > { %v2089_v4 = vsel %vm1609_vm2, %v2088_v41, %v2087_v10  ;;  %v2090_v54 = vrot.slane %v2070_v47, 5  ;;  %v2760_v28 = vpop.f32.mrb[11].mxu0  ;;  %v2779_v63 = vpop.f32.mrb[9].mxu1 }
 0x464   : > { %v2073_v19 = vpop.f32.mrb[10].mxu1 }
 0x465   : > { %v2091_v36 = vsel %vm1611_vm3, %v2090_v54, %v2089_v4  ;;  %v2780_v0 = vpop.f32.mrb[11].mxu1 }
 0x466   : > { %v2093_v51 = vmul.f32 %v2912_v1, %v2091_v36 }
 0x468   : > { %v2096_v48 = vpack.c.bf16 %v2093_v51, %v2093_v51 }
 0x46a   : > { %2786 = vmatmul.mubr.msk.bf16.vlgmr.msra.gmra.mrb[0].mxu1 %vm4468_vm1, %v2096_v48 }
 0x53d   : > { %v2150_v34 = vpop.f32.mrb[0].mxu1 }
 0x53e   : > { %v2789_v2 = vadd.f32 %v2150_v34, %v2094_v59  ;;  %v2787_v11 = vpop.f32.mrb[1].mxu1 }
 0x53f   : > { %v2153_v9 = vpop.f32.mrb[2].mxu1 }
 0x540   : > { %2913 = vtanh.f32 %v2789_v2  ;;  %v2788_v30 = vpop.f32.mrb[3].mxu1  ;;  %v2485_v7 = vmul.f32 -1.442695, %v2789_v2 }
 0x542   : > { %2915 = vpow2.f32 %v2485_v7 }
 0x54a   : > { %v2914_v62 = vpop.eup %2913 }
 0x54b   : > { %2170 = vrot.lane.b32.xlu0 %v2914_v62, %s3054_s21 }
 0x54c   : > { %v2916_v20 = vpop.eup %2915 }
 0x54d   : > { %v2160_v27 = vadd.f32 1.0, %v2916_v20 }
 0x54f   : > { %2917 = vrcp.f32 %v2160_v27  ;;  %2196 = vrot.lane.b32.xlu0 %v2921_v18, %s4423_s27 }
 0x559   : > { %v2918_v61 = vpop.eup %2917 }
 0x55a   : > { %v2168_v3 = vmul.f32 %v2918_v61, %v2166_v60 }
 0x5bd   : > { %v2171_v55 = vpop.permute.xlu0 %2170 }
 0x5be   : > { %v2173_v15 = vmul.f32 %v2918_v61, %v2171_v55 }
 0x5c0   : > { %2175 = vrot.lane.b32.xlu1 %v2173_v15, %s4424_s17 }
 0x5c1   : > { %v2197_v16 = vpop.permute.xlu0 %2196 }
 0x632   : > { %v2176_v40 = vpop.permute.xlu1 %2175 }
 0x633   : > { %v2178_v37 = vadd.f32 %v2176_v40, %v2168_v3 }
 0x635   : > { %2919 = vtanh.f32 %v2178_v37 }
 0x63f   : > { %v2920_v52 = vpop.eup %2919 }
 0x640   : > { %2181 = vrot.lane.b32.xlu1 %v2920_v52, %s3054_s21  ;;  %s2934_s21 = scalar_lea.vmem %s4318_s20, 32 }
 0x641   : > { %p2935_p4 = scmp.ne.s32.totalorder %s4318_s20, %s2934_s21  ;;  %p2942_p8 = scmp.lt.s32.totalorder %s2940_s13, %s2934_s21 }
 0x643   : > { %p2936_p5 = pnand %p2935_p4, %p3162_p9  ;;  %p2943_p10 = por %p2942_p8, %p2941_p7 }
 0x645   : > { %p2937_p6 = pneg %p2936_p5 }
 0x647   : > { %p2944_p11 = pnand %p2943_p10, %p2937_p6 }
 0x6b2   : > { %v2182_v58 = vpop.permute.xlu1 %2181 }
 0x6b3   : > { %v2184_v50 = vmul.f32 %v2918_v61, %v2182_v58 }
 0x6b5   : > { %v2212_v33 = vpack.c.bf16 %v2184_v50, %v2184_v50  ;;  %v2199_v46 = vsel %vm4314_vm8, %v2184_v50, %v2197_v16 }
 0x6b6   : > { %2947 = shalt.err (!%p2944_p11)
}
 0x6b7   : > { %s2948_s18 = scalar_lea.hbm %s4310_s19, 32  ;;  %s2952_s30 = scalar_lea.hbm %s4417_s11, 224 }
 0x6b8   : > { %p2949_p12 = scmp.ne.s32.totalorder %s4310_s19, %s2948_s18  ;;  %p2953_p2 = scmp.lt.u32.totalorder %s4310_s19, %s4417_s11 }
 0x6b9   : > { %p2954_p3 = scmp.lt.u32.totalorder %s2952_s30, %s2948_s18  ;;  %p2956_p5 = scmp.lt.u32.totalorder %s2948_s18, %s4310_s19 }
 0x6ba   : > { %p2950_p0 = pnand %p2949_p12, %p3162_p9 }
 0x6bb   : > { %p2955_p4 = por %p2954_p3, %p2953_p2 }
 0x6bc   : > { %p2951_p1 = pneg %p2950_p0 }
 0x6bd   : > { %p2957_p6 = por %p2956_p5, %p2955_p4 }
 0x6bf   : > { %p2958_p7 = pnand %p2957_p6, %p2951_p1 }
 0x6c1   : > { %2961 = shalt.err (!%p2958_p7)
}
 0x6c2   : > { %2795 = dma.vmem_to_hbm [thread:$0]  (%p3162_p9), %s4318_s20, 32, %s4310_s19, %s2234_s29   ;;  %v2220_v13 = vrot.slane %v2212_v33, %v2219_v5  ;;  %v2206_v22 = vsel %vm4314_vm8, %v2178_v37, %v2166_v60  ;;  %vm2204_vm9 = vcmask 257024   ;;  %vm2224_vm10 = vcmask 254976  }
 0x6c3   : > { %s4471_s27 = smov 32   ;;  %s4472_s17 = smov 96  }
 0x6c4   : > { %2201 = vrot.lane.b32.xlu0 %v2199_v46, %s4471_s27  ;;  %2221 = vrot.lane.b32.xlu1 %v2220_v13, %s4471_s27  ;;  %s2248_s15 = sshll.u32 %s3188_s28, 4  ;;  %s4473_s21 = sshll.u32 %s3038_s24, 5  ;;  %s4358_s15 = int_to_ptr.vmem [resolvable:$true] %s2248_s15 }
 0x6c5   : > { %s4356_s20 = scalar_lea.hbm %s4416_s10, %s4473_s21  ;;  %s2229_s29 = scalar_lea.sflag [#allocation7], %s3178_s16 }
 0x6c6   : > { %s2962_s18 = scalar_lea.vmem %s4358_s15, 32  ;;  %s3058_s30 = smov [#allocation6]  }
 0x6c7   : > { %p2963_p8 = scmp.ne.s32.totalorder %s4358_s15, %s2962_s18  ;;  %s2966_s24 = sshll.u32 %s3058_s30, 4  ;;  %s2967_s24 = int_to_ptr.vmem [resolvable:$false] %s2966_s24 }
 0x6c8   : > { %2208 = vrot.lane.b32.xlu1 %v2206_v22, %s4472_s17  ;;  %s2968_s25 = scalar_lea.vmem %s2967_s24, 64  ;;  %p2969_p12 = scmp.lt.s32.totalorder %s4358_s15, %s2967_s24 }
 0x6c9   : > { %p2964_p10 = pnand %p2963_p8, %p3162_p9  ;;  %p2970_p0 = scmp.lt.s32.totalorder %s2968_s25, %s2962_s18 }
 0x6cb   : > { %p2965_p11 = pneg %p2964_p10  ;;  %p2971_p1 = por %p2970_p0, %p2969_p12 }
 0x6cd   : > { %p2972_p2 = pnand %p2971_p1, %p2965_p11 }
 0x736   : > { %v2202_v6 = vpop.permute.xlu0 %2201  ;;  %v2222_v23 = vpop.permute.xlu1 %2221 }
 0x737   : > { %2205 = vst.msk [vmem:[#allocation2] sm:$0xf] %vm2204_vm9, %v2202_v6 }
 0x738   : > { %2225 = vst.msk [vmem:[%s3188_s28] sm:$0x3] %vm2224_vm10, %v2222_v23 }
 0x739   : > { %2975 = shalt.err (!%p2972_p2)
}
 0x73a   : > { %s2976_s16 = scalar_lea.hbm %s4356_s20, 32  ;;  %s2980_s17 = scalar_lea.hbm %s4416_s10, 224 }
 0x73b   : > { %p2977_p3 = scmp.ne.s32.totalorder %s4356_s20, %s2976_s16  ;;  %p2981_p6 = scmp.lt.u32.totalorder %s4356_s20, %s4416_s10 }
 0x73c   : > { %p2982_p7 = scmp.lt.u32.totalorder %s2980_s17, %s2976_s16  ;;  %p2984_p10 = scmp.lt.u32.totalorder %s2976_s16, %s4356_s20 }
 0x73d   : > { %p2978_p4 = pnand %p2977_p3, %p3162_p9 }
 0x73e   : > { %p2983_p8 = por %p2982_p7, %p2981_p6 }
 0x73f   : > { %p2979_p5 = pneg %p2978_p4 }
 0x740   : > { %p2985_p11 = por %p2984_p10, %p2983_p8 }
 0x742   : > { %p2986_p12 = pnand %p2985_p11, %p2979_p5 }
 0x744   : > { %2989 = shalt.err (!%p2986_p12)
}
 0x745   : > { %2794 = dma.vmem_to_hbm [thread:$0]  (%p3162_p9), %s4358_s15, 32, %s4356_s20, %s2229_s29   ;;  %v2209_v25 = vpop.permute.xlu1 %2208 }
 0x746   : > { %2211 = vst.msk [vmem:[#allocation3] sm:$0xf] %vm2204_vm9, %v2209_v25 }
 0x747 PF: > { %p2805_p0 = scmp.ge.s32.totalorder %s3046_s26, 2  ;;  %s2274_s19 = sand.u32 1, %s3026_s22  }
 0x748   : > { %s2275_s18 = scalar_lea.sflag [#allocation7], %s2274_s19 }
 0x749   : > { %p2799_p1 = pnand %p2805_p0, %p3169_p13 }
 0x74b   : > { %3017 = dma.done.wait (!%p2799_p1), %s2275_s18, 32  }
 0x74c   : > { %3019 = vsyncadd (!%p2799_p1), %s2275_s18, 4294967264  ;;  %s2284_s30 = scalar_lea.sflag [#allocation9], %s2274_s19 }
 0x74d   : > { %3021 = dma.done.wait (!%p2799_p1), %s2284_s30, 32  }
 0x74e   : > { %3023 = vsyncadd (!%p2799_p1), %s2284_s30, 4294967264  ;;  %s34_s26 = sadd.s32 1, %s3046_s26   ;;  %s4474_s12 = sld [smem:[#allocation15_spill]] }
 0x74f   : > { %p31_p9 = scmp.ge.s32.totalorder %s34_s26, 9   ;;  %s4475_s24 = sld [smem:[#allocation13_spill]] }
 0x750   : > { %s4476_s25 = sld [smem:[#allocation14_spill]]  ;;  %s4477_s22 = smov %s3030_s0 }
 0x751   : > { %s4478_s0 = smov %s3034_s23  ;;  %33 = sbr.rel (!%p31_p9) target bundleno = 21 (0x15), region = 124 }
 0x754   : > { %s4479_s23 = smov %s4474_s12 }
 0x758   :  { %2289 = vsyncpa [#allocation7], 1 }
 0x759   :  { %2291 = vsyncpa [#allocation7 + $0x1], 1 }
 0x75a   :  { %2292 = vsyncpa [#allocation9], 1 }
 0x75b   :  { %2294 = vsyncpa [#allocation9 + $0x1], 1 }

</bundles_post_ra>
